<compile_context>
chip_gen: v7x
topology: tpu7x:2x2x1
jax: 0.10.0
libtpu: 0.0.40
codegen_flags: <defaults>
</compile_context>

<pallas_src>
import functools

import jax
import jax.numpy as jnp
from jax.experimental import pallas as pl
from jax.experimental.pallas import tpu as pltpu

_EPS = 1e-5
_LANE = 128


def _round_up(x, m):
    return (x + m - 1) // m * m


def _compiler_params():
    # Generation-aware VMEM budget: ~3/4 of physical capacity, capped at 96 MiB
    # (v5e/v6e: 128 MiB physical -> 96 MiB; v7x: 64 MiB -> 48 MiB).
    try:
        cap = pltpu.get_tpu_info().vmem_capacity_bytes
    except Exception:
        cap = 64 * 1024 * 1024
    return pltpu.CompilerParams(
        dimension_semantics=("parallel",),            # grid over batch: nt = N >= 2
        vmem_limit_bytes=int(min(96 * 1024 * 1024, cap * 3 // 4)),
    )


# ---------------------------------------------------------------------------
# Kernels
# ---------------------------------------------------------------------------
def _conv1_kernel(x_ref, w_ref, y_ref, s_ref, *, taps, ho, wo):
    """conv1 via in-VMEM im2col: taps of shifted windows x accumulated dots.

    x_ref : (1, Hp, Wp, K)  bf16 padded (or space-to-depth'd) image
    w_ref : (T, K, Cp)      bf16 per-tap weight
    y_ref : (1, ho, wo, Cp) bf16 pre-BN conv output
    s_ref : (1, 2, Cp)      f32  [sum, sum_sq] partials for BN1
    """
    cp = w_ref.shape[-1]
    kt = w_ref.shape[1]
    acc = jnp.zeros((ho * wo, cp), jnp.float32)
    for t, (dh, dw) in enumerate(taps):
        xt = x_ref[0, pl.ds(dh, ho), pl.ds(dw, wo), :].reshape(ho * wo, kt)
        acc = acc + jnp.dot(xt, w_ref[t], preferred_element_type=jnp.float32)
    y_ref[0] = acc.reshape(ho, wo, cp).astype(y_ref.dtype)
    s_ref[0] = jnp.concatenate(
        [jnp.sum(acc, axis=0, keepdims=True),
         jnp.sum(acc * acc, axis=0, keepdims=True)], axis=0)


def _conv2_kernel(*refs, ho, wo, has_skip):
    """BN1+ReLU (fused) -> conv2 via in-VMEM halo buffer [+ fused 1x1 skip]."""
    if has_skip:
        (y1_ref, sc1_ref, sh1_ref, w2_ref, xs_ref, ws_ref,
         y2_ref, ysk_ref, s_ref, hbuf_ref) = refs
    else:
        (y1_ref, sc1_ref, sh1_ref, w2_ref,
         y2_ref, s_ref, hbuf_ref) = refs

    cp = w2_ref.shape[-1]
    # Fused BN1 + ReLU on the incoming tile (f32 math), bf16 for the MXU.
    h1 = jnp.maximum(
        y1_ref[0].astype(jnp.float32) * sc1_ref[...] + sh1_ref[...], 0.0)

    # Zero-padded halo buffer in VMEM ("same" padding for the 3x3 conv).
    hbuf_ref[...] = jnp.zeros_like(hbuf_ref)
    hbuf_ref[pl.ds(1, ho), pl.ds(1, wo), :] = h1.astype(hbuf_ref.dtype)

    acc = jnp.zeros((ho * wo, cp), jnp.float32)
    for t in range(9):
        kh, kw = divmod(t, 3)
        xt = hbuf_ref[pl.ds(kh, ho), pl.ds(kw, wo), :].reshape(ho * wo, cp)
        acc = acc + jnp.dot(xt, w2_ref[t], preferred_element_type=jnp.float32)
    y2_ref[0] = acc.reshape(ho, wo, cp).astype(y2_ref.dtype)

    rows = [jnp.sum(acc, axis=0, keepdims=True),
            jnp.sum(acc * acc, axis=0, keepdims=True)]
    if has_skip:
        cin = xs_ref.shape[-1]
        ysk = jnp.dot(xs_ref[0].reshape(ho * wo, cin), ws_ref[...],
                      preferred_element_type=jnp.float32)
        ysk_ref[0] = ysk.reshape(ho, wo, cp).astype(ysk_ref.dtype)
        rows += [jnp.sum(ysk, axis=0, keepdims=True),
                 jnp.sum(ysk * ysk, axis=0, keepdims=True)]
    s_ref[0] = jnp.concatenate(rows, axis=0)


def _epilogue_proj_kernel(y2_ref, ysk_ref, sc2_ref, sh2_ref, scs_ref, shs_ref,
                          o_ref):
    out = (y2_ref[0].astype(jnp.float32) * sc2_ref[...] + sh2_ref[...]
           + ysk_ref[0].astype(jnp.float32) * scs_ref[...] + shs_ref[...])
    o_ref[0] = jnp.maximum(out, 0.0)


def _epilogue_id_kernel(y2_ref, id_ref, sc2_ref, sh2_ref, o_ref):
    out = (y2_ref[0].astype(jnp.float32) * sc2_ref[...] + sh2_ref[...]
           + id_ref[0].astype(jnp.float32))
    o_ref[0] = jnp.maximum(out, 0.0)


# ---------------------------------------------------------------------------
# pallas_call wrappers (grid over batch; megacore-parallel)
# ---------------------------------------------------------------------------
def _conv1(x_im, w1r, taps, ho, wo, n):
    cp = w1r.shape[-1]
    return pl.pallas_call(
        functools.partial(_conv1_kernel, taps=taps, ho=ho, wo=wo),
        out_shape=(jax.ShapeDtypeStruct((n, ho, wo, cp), jnp.bfloat16),
                   jax.ShapeDtypeStruct((n, 2, cp), jnp.float32)),
        grid=(n,),
        in_specs=[pl.BlockSpec((1,) + x_im.shape[1:], lambda i: (i, 0, 0, 0)),
                  pl.BlockSpec(w1r.shape, lambda i: (0, 0, 0))],
        out_specs=(pl.BlockSpec((1, ho, wo, cp), lambda i: (i, 0, 0, 0)),
                   pl.BlockSpec((1, 2, cp), lambda i: (i, 0, 0))),
        compiler_params=_compiler_params(),
    )(x_im, w1r)


def _conv2(y1, sc1, sh1, w2r, xs, ws, ho, wo, n, has_skip):
    cp = w2r.shape[-1]
    img = pl.BlockSpec((1, ho, wo, cp), lambda i: (i, 0, 0, 0))
    vec = pl.BlockSpec((1, cp), lambda i: (0, 0))
    in_specs = [img, vec, vec, pl.BlockSpec(w2r.shape, lambda i: (0, 0, 0))]
    args = [y1, sc1, sh1, w2r]
    out_shape = [jax.ShapeDtypeStruct((n, ho, wo, cp), jnp.bfloat16)]
    out_specs = [img]
    nstat = 2
    if has_skip:
        in_specs += [pl.BlockSpec((1, ho, wo, xs.shape[-1]),
                                  lambda i: (i, 0, 0, 0)),
                     pl.BlockSpec(ws.shape, lambda i: (0, 0))]
        args += [xs, ws]
        out_shape.append(jax.ShapeDtypeStruct((n, ho, wo, cp), jnp.bfloat16))
        out_specs.append(img)
        nstat = 4
    out_shape.append(jax.ShapeDtypeStruct((n, nstat, cp), jnp.float32))
    out_specs.append(pl.BlockSpec((1, nstat, cp), lambda i: (i, 0, 0)))
    return pl.pallas_call(
        functools.partial(_conv2_kernel, ho=ho, wo=wo, has_skip=has_skip),
        out_shape=tuple(out_shape),
        grid=(n,),
        in_specs=in_specs,
        out_specs=tuple(out_specs),
        scratch_shapes=[pltpu.VMEM((ho + 2, wo + 2, cp), jnp.bfloat16)],
        compiler_params=_compiler_params(),
    )(*args)


def _epilogue_proj(y2, ysk, sc2, sh2, scs, shs, ho, wo, n):
    cp = y2.shape[-1]
    img = pl.BlockSpec((1, ho, wo, cp), lambda i: (i, 0, 0, 0))
    vec = pl.BlockSpec((1, cp), lambda i: (0, 0))
    return pl.pallas_call(
        _epilogue_proj_kernel,
        out_shape=jax.ShapeDtypeStruct((n, ho, wo, cp), jnp.float32),
        grid=(n,),
        in_specs=[img, img, vec, vec, vec, vec],
        out_specs=img,
        compiler_params=_compiler_params(),
    )(y2, ysk, sc2, sh2, scs, shs)


def _epilogue_id(y2, idv, sc2, sh2, ho, wo, n):
    cp = y2.shape[-1]
    img = pl.BlockSpec((1, ho, wo, cp), lambda i: (i, 0, 0, 0))
    vec = pl.BlockSpec((1, cp), lambda i: (0, 0))
    return pl.pallas_call(
        _epilogue_id_kernel,
        out_shape=jax.ShapeDtypeStruct((n, ho, wo, cp), jnp.float32),
        grid=(n,),
        in_specs=[img, img, vec, vec],
        out_specs=img,
        compiler_params=_compiler_params(),
    )(y2, idv, sc2, sh2)


# ---------------------------------------------------------------------------
# Host-side glue
# ---------------------------------------------------------------------------
def _bn_scale_shift(s0, s1, m, gamma, beta, cp, eps=_EPS):
    """Fold batch stats (training mode, biased var) + affine into scale/shift."""
    mean = s0 / m
    var = jnp.maximum(s1 / m - mean * mean, 0.0)
    g = jnp.zeros((cp,), jnp.float32).at[:gamma.shape[0]].set(gamma)
    b = jnp.zeros((cp,), jnp.float32).at[:beta.shape[0]].set(beta)
    scale = g * jax.lax.rsqrt(var + eps)
    shift = b - mean * scale
    return scale.reshape(1, cp), shift.reshape(1, cp)


def _prep_conv1(x_bf, w1_khkwcico, stride, cp):
    """Build the conv1 kernel input image + per-tap weight (no 9x expansion)."""
    N, H, W, Cin = x_bf.shape
    Cout = w1_khkwcico.shape[-1]
    if stride == 1:
        x_im = jnp.pad(x_bf, ((0, 0), (1, 1), (1, 1), (0, 0)))
        taps = tuple((kh, kw) for kh in range(3) for kw in range(3))
        w1r = jnp.pad(w1_khkwcico.reshape(9, Cin, Cout),
                      ((0, 0), (0, 0), (0, cp - Cout)))
        return x_im, w1r.astype(jnp.bfloat16), taps
    # stride == 2: space-to-depth of the padded image -> stride-1 2x2 "conv".
    ph, pw = (H + 2) % 2, (W + 2) % 2
    xp = jnp.pad(x_bf, ((0, 0), (1, 1 + ph), (1, 1 + pw), (0, 0)))
    Hs, Ws = (H + 2 + ph) // 2, (W + 2 + pw) // 2
    x_im = xp.reshape(N, Hs, 2, Ws, 2, Cin).transpose(0, 1, 3, 2, 4, 5)
    x_im = x_im.reshape(N, Hs, Ws, 4 * Cin)
    w1r = jnp.zeros((2, 2, 2, 2, Cin, Cout), jnp.float32)
    for bh in range(2):
        for bw in range(2):
            for p in range(2):
                for q in range(2):
                    kh, kw = 2 * bh + p, 2 * bw + q
                    if kh < 3 and kw < 3:
                        w1r = w1r.at[bh, bw, p, q].set(w1_khkwcico[kh, kw])
    w1r = jnp.pad(w1r.reshape(4, 4 * Cin, Cout), ((0, 0), (0, 0), (0, cp - Cout)))
    taps = tuple((bh, bw) for bh in range(2) for bw in range(2))
    return x_im, w1r.astype(jnp.bfloat16), taps


def residual_block_forward(x_nchw, params, *, stride):
    """Forward of ResidualBlock. x: (N, Cin, H, W) f32 -> (N, Cout, Ho, Wo)."""
    assert stride in (1, 2), "ResNet basic block uses stride 1 or 2"
    x = jnp.transpose(x_nchw, (0, 2, 3, 1)).astype(jnp.float32)      # NHWC
    N, H, W, Cin = x.shape
    Cout = params["conv1_w"].shape[0]
    Ho = (H + 2 - 3) // stride + 1
    Wo = (W + 2 - 3) // stride + 1
    M = N * Ho * Wo
    Cp = _round_up(Cout, _LANE)
    x_bf = x.astype(jnp.bfloat16)

    # ---- conv1 (3x3, stride) with in-kernel im2col; BN1 stats emitted ------
    w1 = params["conv1_w"].astype(jnp.float32).transpose(2, 3, 1, 0)  # (3,3,Ci,Co)
    x_im, w1r, taps1 = _prep_conv1(x_bf, w1, stride, Cp)
    y1, st1 = _conv1(x_im, w1r, taps1, Ho, Wo, N)
    s1 = jnp.sum(st1, axis=0)                                         # (2, Cp)
    sc1, sh1 = _bn_scale_shift(s1[0], s1[1], M,
                               params["bn1_gamma"], params["bn1_beta"], Cp)

    # ---- conv2 (3x3, s=1) with fused BN1+ReLU input [+ fused 1x1 skip] -----
    w2 = params["conv2_w"].astype(jnp.float32).transpose(2, 3, 1, 0)
    w2r = jnp.pad(w2.reshape(9, Cout, Cout),
                  ((0, 0), (0, Cp - Cout), (0, Cp - Cout))).astype(jnp.bfloat16)
    has_skip = (Cin != Cout) or (stride != 1)

    if has_skip:
        xs = x_bf[:, ::stride, ::stride, :]                           # (N,Ho,Wo,Cin)
        ws = params["skip_w"].astype(jnp.float32).reshape(Cout, Cin).T
        ws = jnp.pad(ws, ((0, 0), (0, Cp - Cout))).astype(jnp.bfloat16)
        y2, ysk, st2 = _conv2(y1, sc1, sh1, w2r, xs, ws, Ho, Wo, N, True)
        s2 = jnp.sum(st2, axis=0)                                     # (4, Cp)
        sc2, sh2 = _bn_scale_shift(s2[0], s2[1], M,
                                   params["bn2_gamma"], params["bn2_beta"], Cp)
        scs, shs = _bn_scale_shift(s2[2], s2[3], M,
                                   params["skip_gamma"], params["skip_beta"], Cp)
        out = _epilogue_proj(y2, ysk, sc2, sh2, scs, shs, Ho, Wo, N)
    else:
        y2, st2 = _conv2(y1, sc1, sh1, w2r, None, None, Ho, Wo, N, False)
        s2 = jnp.sum(st2, axis=0)                                     # (2, Cp)
        sc2, sh2 = _bn_scale_shift(s2[0], s2[1], M,
                                   params["bn2_gamma"], params["bn2_beta"], Cp)
        idv = jnp.pad(x_bf, ((0, 0), (0, 0), (0, 0), (0, Cp - Cin)))  # bf16 residual
        out = _epilogue_id(y2, idv, sc2, sh2, Ho, Wo, N)

    out = out[:, :, :, :Cout]
    return jnp.transpose(out, (0, 3, 1, 2))                           # back to NCHW


_forward_jit = jax.jit(residual_block_forward, static_argnames=("stride",))


# ---------------------------------------------------------------------------
# Pure-JAX reference (f32, HIGHEST) for correctness check
# ---------------------------------------------------------------------------
def _ref_forward(x, params, *, stride, eps=_EPS):
    def conv(x, w, s, pad):
        return jax.lax.conv_general_dilated(
            x, w, (s, s), [(pad, pad), (pad, pad)],
            dimension_numbers=("NCHW", "OIHW", "NCHW"),
            precision=jax.lax.Precision.HIGHEST)

    def bn(y, g, b):
        mean = jnp.mean(y, axis=(0, 2, 3), keepdims=True)
        var = jnp.mean((y - mean) ** 2, axis=(0, 2, 3), keepdims=True)
        return (y - mean) * jax.lax.rsqrt(var + eps) * g.reshape(1, -1, 1, 1) \
               + b.reshape(1, -1, 1, 1)

    Cin = x.shape[1]
    Cout = params["conv1_w"].shape[0]
    out = jax.nn.relu(bn(conv(x, params["conv1_w"], stride, 1),
                         params["bn1_gamma"], params["bn1_beta"]))
    out = bn(conv(out, params["conv2_w"], 1, 1),
             params["bn2_gamma"], params["bn2_beta"])
    if Cin != Cout or stride != 1:
        identity = bn(conv(x, params["skip_w"], stride, 0),
                      params["skip_gamma"], params["skip_beta"])
    else:
        identity = x
    return jax.nn.relu(out + identity)


# ---------------------------------------------------------------------------
def _make_params(key, cin, cout, projection):
    ks = jax.random.split(key, 8)
    p = {
        "conv1_w": 0.1 * jax.random.normal(ks[0], (cout, cin, 3, 3), jnp.float32),
        "conv2_w": 0.1 * jax.random.normal(ks[1], (cout, cout, 3, 3), jnp.float32),
        "bn1_gamma": 1.0 + 0.1 * jax.random.normal(ks[3], (cout,), jnp.float32),
        "bn1_beta": 0.1 * jax.random.normal(ks[4], (cout,), jnp.float32),
        "bn2_gamma": 1.0 + 0.1 * jax.random.normal(ks[5], (cout,), jnp.float32),
        "bn2_beta": 0.1 * jax.random.normal(ks[6], (cout,), jnp.float32),
    }
    if projection:
        p["skip_w"] = 0.1 * jax.random.normal(ks[2], (cout, cin, 1, 1), jnp.float32)
        p["skip_gamma"] = 1.0 + 0.1 * jax.random.normal(ks[7], (cout,), jnp.float32)
        p["skip_beta"] = 0.1 * jax.random.normal(ks[7], (cout,), jnp.float32)
    return p


if __name__ == "__main__":
    key = jax.random.PRNGKey(0)
    kx, kp1, kp2 = jax.random.split(key, 3)

    # Case 1: projection skip (Cin != Cout, stride 2) -----------------------
    N, Cin, Cout, H, W, stride = 2, 4, 8, 16, 16, 2
    params = _make_params(kp1, Cin, Cout, projection=True)
    x = jax.random.normal(kx, (N, Cin, H, W), jnp.float32)
    out = jax.block_until_ready(_forward_jit(x, params, stride=stride))
    ref = jax.block_until_ready(_ref_forward(x, params, stride=stride))
    assert out.shape == (N, Cout, H // stride, W // stride), out.shape
    md = float(jnp.max(jnp.abs(out - ref)))
    assert jnp.allclose(out, ref, rtol=3e-2, atol=3e-2), md

    # Case 2: identity skip (Cin == Cout, stride 1) --------------------------
    params2 = _make_params(kp2, Cout, Cout, projection=False)
    x2 = jax.random.normal(kp2, (N, Cout, H, W), jnp.float32)
    out2 = jax.block_until_ready(_forward_jit(x2, params2, stride=1))
    ref2 = jax.block_until_ready(_ref_forward(x2, params2, stride=1))
    assert out2.shape == (N, Cout, H, W), out2.shape
    md2 = float(jnp.max(jnp.abs(out2 - ref2)))
    assert jnp.allclose(out2, ref2, rtol=3e-2, atol=3e-2), md2

    print("KERNEL_OK")
</pallas_src>

<mosaic_0001>
module attributes {stable_mosaic.version = 11 : i64} {
  func.func @_conv1_kernel(%arg0: i32, %arg1: memref<1x9x9x16xbf16, #tpu.memory_space<vmem>>, %arg2: memref<4x16x128xbf16, #tpu.memory_space<vmem>>, %arg3: memref<1x8x8x128xbf16, #tpu.memory_space<vmem>>, %arg4: memref<1x2x128xf32, #tpu.memory_space<vmem>>) attributes {dimension_semantics = [#tpu.dimension_semantics<parallel>], iteration_bounds = array<i64: 2>, scalar_prefetch = 0 : i64, scratch_operands = 0 : i64, tpu.core_type = #tpu.core_type<tc>, window_params = [{transform_indices = @transform_0, window_bounds = array<i64: 1, 9, 9, 16>}, {pipeline_mode = #tpu.pipeline_mode<synchronous>, transform_indices = @transform_1, window_bounds = array<i64: 4, 16, 128>}, {transform_indices = @transform_2, window_bounds = array<i64: 1, 8, 8, 128>}, {transform_indices = @transform_3, window_bounds = array<i64: 1, 2, 128>}]} {
    %cst = arith.constant 0.000000e+00 : f32
    %0 = vector.broadcast %cst : f32 to vector<64x128xf32>
    %c0 = arith.constant 0 : index
    %c0_0 = arith.constant 0 : index
    %c0_1 = arith.constant 0 : index
    %c0_2 = arith.constant 0 : index
    %1 = vector.load %arg1[%c0, %c0_0, %c0_1, %c0_2] : memref<1x9x9x16xbf16, #tpu.memory_space<vmem>>, vector<1x8x8x16xbf16>
    %2 = vector.shape_cast %1 : vector<1x8x8x16xbf16> to vector<8x8x16xbf16>
    %3 = vector.shape_cast %2 : vector<8x8x16xbf16> to vector<64x16xbf16>
    %c0_3 = arith.constant 0 : index
    %c0_4 = arith.constant 0 : index
    %c0_5 = arith.constant 0 : index
    %4 = vector.load %arg2[%c0_3, %c0_4, %c0_5] : memref<4x16x128xbf16, #tpu.memory_space<vmem>>, vector<1x16x128xbf16>
    %5 = vector.shape_cast %4 : vector<1x16x128xbf16> to vector<16x128xbf16>
    %cst_6 = arith.constant dense<0.000000e+00> : vector<64x128xf32>
    %6 = tpu.matmul %3, %5, %cst_6 {dimension_numbers = #tpu.dot_dimension_numbers<[1], [0], [0], [1], [0, 0, 1, 1], [], []>} : vector<64x16xbf16>, vector<16x128xbf16>, vector<64x128xf32> -> vector<64x128xf32>
    %7 = arith.addf %0, %6 : vector<64x128xf32>
    %c0_7 = arith.constant 0 : index
    %c0_8 = arith.constant 0 : index
    %c1 = arith.constant 1 : index
    %c0_9 = arith.constant 0 : index
    %8 = vector.load %arg1[%c0_7, %c0_8, %c1, %c0_9] : memref<1x9x9x16xbf16, #tpu.memory_space<vmem>>, vector<1x8x8x16xbf16>
    %9 = vector.shape_cast %8 : vector<1x8x8x16xbf16> to vector<8x8x16xbf16>
    %10 = vector.shape_cast %9 : vector<8x8x16xbf16> to vector<64x16xbf16>
    %c1_10 = arith.constant 1 : index
    %c0_11 = arith.constant 0 : index
    %c0_12 = arith.constant 0 : index
    %11 = vector.load %arg2[%c1_10, %c0_11, %c0_12] : memref<4x16x128xbf16, #tpu.memory_space<vmem>>, vector<1x16x128xbf16>
    %12 = vector.shape_cast %11 : vector<1x16x128xbf16> to vector<16x128xbf16>
    %cst_13 = arith.constant dense<0.000000e+00> : vector<64x128xf32>
    %13 = tpu.matmul %10, %12, %cst_13 {dimension_numbers = #tpu.dot_dimension_numbers<[1], [0], [0], [1], [0, 0, 1, 1], [], []>} : vector<64x16xbf16>, vector<16x128xbf16>, vector<64x128xf32> -> vector<64x128xf32>
    %14 = arith.addf %7, %13 : vector<64x128xf32>
    %c0_14 = arith.constant 0 : index
    %c1_15 = arith.constant 1 : index
    %c0_16 = arith.constant 0 : index
    %c0_17 = arith.constant 0 : index
    %15 = vector.load %arg1[%c0_14, %c1_15, %c0_16, %c0_17] : memref<1x9x9x16xbf16, #tpu.memory_space<vmem>>, vector<1x8x8x16xbf16>
    %16 = vector.shape_cast %15 : vector<1x8x8x16xbf16> to vector<8x8x16xbf16>
    %17 = vector.shape_cast %16 : vector<8x8x16xbf16> to vector<64x16xbf16>
    %c2 = arith.constant 2 : index
    %c0_18 = arith.constant 0 : index
    %c0_19 = arith.constant 0 : index
    %18 = vector.load %arg2[%c2, %c0_18, %c0_19] : memref<4x16x128xbf16, #tpu.memory_space<vmem>>, vector<1x16x128xbf16>
    %19 = vector.shape_cast %18 : vector<1x16x128xbf16> to vector<16x128xbf16>
    %cst_20 = arith.constant dense<0.000000e+00> : vector<64x128xf32>
    %20 = tpu.matmul %17, %19, %cst_20 {dimension_numbers = #tpu.dot_dimension_numbers<[1], [0], [0], [1], [0, 0, 1, 1], [], []>} : vector<64x16xbf16>, vector<16x128xbf16>, vector<64x128xf32> -> vector<64x128xf32>
    %21 = arith.addf %14, %20 : vector<64x128xf32>
    %c0_21 = arith.constant 0 : index
    %c1_22 = arith.constant 1 : index
    %c1_23 = arith.constant 1 : index
    %c0_24 = arith.constant 0 : index
    %22 = vector.load %arg1[%c0_21, %c1_22, %c1_23, %c0_24] : memref<1x9x9x16xbf16, #tpu.memory_space<vmem>>, vector<1x8x8x16xbf16>
    %23 = vector.shape_cast %22 : vector<1x8x8x16xbf16> to vector<8x8x16xbf16>
    %24 = vector.shape_cast %23 : vector<8x8x16xbf16> to vector<64x16xbf16>
    %c3 = arith.constant 3 : index
    %c0_25 = arith.constant 0 : index
    %c0_26 = arith.constant 0 : index
    %25 = vector.load %arg2[%c3, %c0_25, %c0_26] : memref<4x16x128xbf16, #tpu.memory_space<vmem>>, vector<1x16x128xbf16>
    %26 = vector.shape_cast %25 : vector<1x16x128xbf16> to vector<16x128xbf16>
    %cst_27 = arith.constant dense<0.000000e+00> : vector<64x128xf32>
    %27 = tpu.matmul %24, %26, %cst_27 {dimension_numbers = #tpu.dot_dimension_numbers<[1], [0], [0], [1], [0, 0, 1, 1], [], []>} : vector<64x16xbf16>, vector<16x128xbf16>, vector<64x128xf32> -> vector<64x128xf32>
    %28 = arith.addf %21, %27 : vector<64x128xf32>
    %29 = vector.shape_cast %28 : vector<64x128xf32> to vector<8x8x128xf32>
    %30 = arith.truncf %29 : vector<8x8x128xf32> to vector<8x8x128xbf16>
    %c0_28 = arith.constant 0 : index
    %c0_29 = arith.constant 0 : index
    %c0_30 = arith.constant 0 : index
    %c0_31 = arith.constant 0 : index
    %31 = vector.load %arg3[%c0_28, %c0_29, %c0_30, %c0_31] : memref<1x8x8x128xbf16, #tpu.memory_space<vmem>>, vector<1x8x8x128xbf16>
    %32 = vector.shape_cast %31 : vector<1x8x8x128xbf16> to vector<8x8x128xbf16>
    %33 = vector.shape_cast %30 : vector<8x8x128xbf16> to vector<1x8x8x128xbf16>
    tpu.vector_store %arg3[%c0_28, %c0_29, %c0_30, %c0_31], %33 {strides = array<i32>} : memref<1x8x8x128xbf16, #tpu.memory_space<vmem>>, vector<1x8x8x128xbf16>,
    %cst_32 = arith.constant dense<0.000000e+00> : vector<128xf32>
    %34 = vector.multi_reduction <add>, %28, %cst_32 [0] : vector<64x128xf32> to vector<128xf32>
    %35 = vector.shape_cast %34 : vector<128xf32> to vector<1x128xf32>
    %36 = arith.mulf %28, %28 : vector<64x128xf32>
    %cst_33 = arith.constant dense<0.000000e+00> : vector<128xf32>
    %37 = vector.multi_reduction <add>, %36, %cst_33 [0] : vector<64x128xf32> to vector<128xf32>
    %38 = vector.shape_cast %37 : vector<128xf32> to vector<1x128xf32>
    %39 = tpu.concatenate %35, %38 in 0 : vector<1x128xf32>, vector<1x128xf32> -> vector<2x128xf32>
    %c0_34 = arith.constant 0 : index
    %c0_35 = arith.constant 0 : index
    %c0_36 = arith.constant 0 : index
    %40 = vector.load %arg4[%c0_34, %c0_35, %c0_36] : memref<1x2x128xf32, #tpu.memory_space<vmem>>, vector<1x2x128xf32>
    %41 = vector.shape_cast %40 : vector<1x2x128xf32> to vector<2x128xf32>
    %42 = vector.shape_cast %39 : vector<2x128xf32> to vector<1x2x128xf32>
    tpu.vector_store %arg4[%c0_34, %c0_35, %c0_36], %42 {strides = array<i32>} : memref<1x2x128xf32, #tpu.memory_space<vmem>>, vector<1x2x128xf32>,
    return
  }
  func.func @transform_0(%arg0: i32) -> (i32, i32, i32, i32) {
    %c0_i32 = arith.constant 0 : i32
    %c0_i32_0 = arith.constant 0 : i32
    %c0_i32_1 = arith.constant 0 : i32
    %c0_i32_2 = arith.constant 0 : i32
    return %arg0, %c0_i32, %c0_i32_0, %c0_i32_1 : i32, i32, i32, i32
  }
  func.func @transform_1(%arg0: i32) -> (i32, i32, i32) {
    %c0_i32 = arith.constant 0 : i32
    %c0_i32_0 = arith.constant 0 : i32
    %c0_i32_1 = arith.constant 0 : i32
    %c0_i32_2 = arith.constant 0 : i32
    return %c0_i32, %c0_i32_0, %c0_i32_1 : i32, i32, i32
  }
  func.func @transform_2(%arg0: i32) -> (i32, i32, i32, i32) {
    %c0_i32 = arith.constant 0 : i32
    %c0_i32_0 = arith.constant 0 : i32
    %c0_i32_1 = arith.constant 0 : i32
    %c0_i32_2 = arith.constant 0 : i32
    return %arg0, %c0_i32, %c0_i32_0, %c0_i32_1 : i32, i32, i32, i32
  }
  func.func @transform_3(%arg0: i32) -> (i32, i32, i32) {
    %c0_i32 = arith.constant 0 : i32
    %c0_i32_0 = arith.constant 0 : i32
    %c0_i32_1 = arith.constant 0 : i32
    return %arg0, %c0_i32, %c0_i32_0 : i32, i32, i32
  }
}

module attributes {stable_mosaic.version = 11 : i64} {
  func.func @_conv2_kernel(%arg0: i32, %arg1: memref<1x8x8x128xbf16, #tpu.memory_space<vmem>>, %arg2: memref<1x128xf32, #tpu.memory_space<vmem>>, %arg3: memref<1x128xf32, #tpu.memory_space<vmem>>, %arg4: memref<9x128x128xbf16, #tpu.memory_space<vmem>>, %arg5: memref<1x8x8x4xbf16, #tpu.memory_space<vmem>>, %arg6: memref<4x128xbf16, #tpu.memory_space<vmem>>, %arg7: memref<1x8x8x128xbf16, #tpu.memory_space<vmem>>, %arg8: memref<1x8x8x128xbf16, #tpu.memory_space<vmem>>, %arg9: memref<1x4x128xf32, #tpu.memory_space<vmem>>, %arg10: memref<10x10x128xbf16, #tpu.memory_space<vmem>>) attributes {dimension_semantics = [#tpu.dimension_semantics<parallel>], iteration_bounds = array<i64: 2>, scalar_prefetch = 0 : i64, scratch_operands = 1 : i64, tpu.core_type = #tpu.core_type<tc>, window_params = [{transform_indices = @transform_0, window_bounds = array<i64: 1, 8, 8, 128>}, {pipeline_mode = #tpu.pipeline_mode<synchronous>, transform_indices = @transform_1, window_bounds = array<i64: 1, 128>}, {pipeline_mode = #tpu.pipeline_mode<synchronous>, transform_indices = @transform_2, window_bounds = array<i64: 1, 128>}, {pipeline_mode = #tpu.pipeline_mode<synchronous>, transform_indices = @transform_3, window_bounds = array<i64: 9, 128, 128>}, {transform_indices = @transform_4, window_bounds = array<i64: 1, 8, 8, 4>}, {pipeline_mode = #tpu.pipeline_mode<synchronous>, transform_indices = @transform_5, window_bounds = array<i64: 4, 128>}, {transform_indices = @transform_6, window_bounds = array<i64: 1, 8, 8, 128>}, {transform_indices = @transform_7, window_bounds = array<i64: 1, 8, 8, 128>}, {transform_indices = @transform_8, window_bounds = array<i64: 1, 4, 128>}]} {
    %c0 = arith.constant 0 : index
    %c0_0 = arith.constant 0 : index
    %c0_1 = arith.constant 0 : index
    %c0_2 = arith.constant 0 : index
    %0 = vector.load %arg1[%c0, %c0_0, %c0_1, %c0_2] : memref<1x8x8x128xbf16, #tpu.memory_space<vmem>>, vector<1x8x8x128xbf16>
    %1 = vector.shape_cast %0 : vector<1x8x8x128xbf16> to vector<8x8x128xbf16>
    %2 = arith.extf %1 : vector<8x8x128xbf16> to vector<8x8x128xf32>
    %c0_3 = arith.constant 0 : index
    %c0_4 = arith.constant 0 : index
    %3 = vector.load %arg2[%c0_3, %c0_4] : memref<1x128xf32, #tpu.memory_space<vmem>>, vector<1x128xf32>
    %4 = vector.shape_cast %3 : vector<1x128xf32> to vector<1x1x128xf32>
    %5 = vector.broadcast %4 : vector<1x1x128xf32> to vector<8x8x128xf32>
    %6 = arith.mulf %2, %5 : vector<8x8x128xf32>
    %c0_5 = arith.constant 0 : index
    %c0_6 = arith.constant 0 : index
    %7 = vector.load %arg3[%c0_5, %c0_6] : memref<1x128xf32, #tpu.memory_space<vmem>>, vector<1x128xf32>
    %8 = vector.shape_cast %7 : vector<1x128xf32> to vector<1x1x128xf32>
    %9 = vector.broadcast %8 : vector<1x1x128xf32> to vector<8x8x128xf32>
    %10 = arith.addf %6, %9 : vector<8x8x128xf32>
    %cst = arith.constant 0.000000e+00 : f32
    %11 = vector.broadcast %cst : f32 to vector<8x8x128xf32>
    %12 = arith.maximumf %10, %11 : vector<8x8x128xf32>
    %cst_7 = arith.constant 0.000000e+00 : bf16
    %13 = vector.broadcast %cst_7 : bf16 to vector<10x10x128xbf16>
    %c0_8 = arith.constant 0 : index
    %c0_9 = arith.constant 0 : index
    %c0_10 = arith.constant 0 : index
    %14 = vector.load %arg10[%c0_8, %c0_9, %c0_10] : memref<10x10x128xbf16, #tpu.memory_space<vmem>>, vector<10x10x128xbf16>
    tpu.vector_store %arg10[%c0_8, %c0_9, %c0_10], %13 {strides = array<i32>} : memref<10x10x128xbf16, #tpu.memory_space<vmem>>, vector<10x10x128xbf16>,
    %15 = arith.truncf %12 : vector<8x8x128xf32> to vector<8x8x128xbf16>
    %c1 = arith.constant 1 : index
    %c1_11 = arith.constant 1 : index
    %c0_12 = arith.constant 0 : index
    %16 = vector.load %arg10[%c1, %c1_11, %c0_12] : memref<10x10x128xbf16, #tpu.memory_space<vmem>>, vector<8x8x128xbf16>
    tpu.vector_store %arg10[%c1, %c1_11, %c0_12], %15 {strides = array<i32>} : memref<10x10x128xbf16, #tpu.memory_space<vmem>>, vector<8x8x128xbf16>,
    %cst_13 = arith.constant 0.000000e+00 : f32
    %17 = vector.broadcast %cst_13 : f32 to vector<64x128xf32>
    %c0_14 = arith.constant 0 : index
    %c0_15 = arith.constant 0 : index
    %c0_16 = arith.constant 0 : index
    %18 = vector.load %arg10[%c0_14, %c0_15, %c0_16] : memref<10x10x128xbf16, #tpu.memory_space<vmem>>, vector<8x8x128xbf16>
    %19 = vector.shape_cast %18 : vector<8x8x128xbf16> to vector<64x128xbf16>
    %c0_17 = arith.constant 0 : index
    %c0_18 = arith.constant 0 : index
    %c0_19 = arith.constant 0 : index
    %20 = vector.load %arg4[%c0_17, %c0_18, %c0_19] : memref<9x128x128xbf16, #tpu.memory_space<vmem>>, vector<1x128x128xbf16>
    %21 = vector.shape_cast %20 : vector<1x128x128xbf16> to vector<128x128xbf16>
    %cst_20 = arith.constant dense<0.000000e+00> : vector<64x128xf32>
    %22 = tpu.matmul %19, %21, %cst_20 {dimension_numbers = #tpu.dot_dimension_numbers<[1], [0], [0], [1], [0, 0, 1, 1], [], []>} : vector<64x128xbf16>, vector<128x128xbf16>, vector<64x128xf32> -> vector<64x128xf32>
    %23 = arith.addf %17, %22 : vector<64x128xf32>
    %c0_21 = arith.constant 0 : index
    %c1_22 = arith.constant 1 : index
    %c0_23 = arith.constant 0 : index
    %24 = vector.load %arg10[%c0_21, %c1_22, %c0_23] : memref<10x10x128xbf16, #tpu.memory_space<vmem>>, vector<8x8x128xbf16>
    %25 = vector.shape_cast %24 : vector<8x8x128xbf16> to vector<64x128xbf16>
    %c1_24 = arith.constant 1 : index
    %c0_25 = arith.constant 0 : index
    %c0_26 = arith.constant 0 : index
    %26 = vector.load %arg4[%c1_24, %c0_25, %c0_26] : memref<9x128x128xbf16, #tpu.memory_space<vmem>>, vector<1x128x128xbf16>
    %27 = vector.shape_cast %26 : vector<1x128x128xbf16> to vector<128x128xbf16>
    %cst_27 = arith.constant dense<0.000000e+00> : vector<64x128xf32>
    %28 = tpu.matmul %25, %27, %cst_27 {dimension_numbers = #tpu.dot_dimension_numbers<[1], [0], [0], [1], [0, 0, 1, 1], [], []>} : vector<64x128xbf16>, vector<128x128xbf16>, vector<64x128xf32> -> vector<64x128xf32>
    %29 = arith.addf %23, %28 : vector<64x128xf32>
    %c0_28 = arith.constant 0 : index
    %c2 = arith.constant 2 : index
    %c0_29 = arith.constant 0 : index
    %30 = vector.load %arg10[%c0_28, %c2, %c0_29] : memref<10x10x128xbf16, #tpu.memory_space<vmem>>, vector<8x8x128xbf16>
    %31 = vector.shape_cast %30 : vector<8x8x128xbf16> to vector<64x128xbf16>
    %c2_30 = arith.constant 2 : index
    %c0_31 = arith.constant 0 : index
    %c0_32 = arith.constant 0 : index
    %32 = vector.load %arg4[%c2_30, %c0_31, %c0_32] : memref<9x128x128xbf16, #tpu.memory_space<vmem>>, vector<1x128x128xbf16>
    %33 = vector.shape_cast %32 : vector<1x128x128xbf16> to vector<128x128xbf16>
    %cst_33 = arith.constant dense<0.000000e+00> : vector<64x128xf32>
    %34 = tpu.matmul %31, %33, %cst_33 {dimension_numbers = #tpu.dot_dimension_numbers<[1], [0], [0], [1], [0, 0, 1, 1], [], []>} : vector<64x128xbf16>, vector<128x128xbf16>, vector<64x128xf32> -> vector<64x128xf32>
    %35 = arith.addf %29, %34 : vector<64x128xf32>
    %c1_34 = arith.constant 1 : index
    %c0_35 = arith.constant 0 : index
    %c0_36 = arith.constant 0 : index
    %36 = vector.load %arg10[%c1_34, %c0_35, %c0_36] : memref<10x10x128xbf16, #tpu.memory_space<vmem>>, vector<8x8x128xbf16>
    %37 = vector.shape_cast %36 : vector<8x8x128xbf16> to vector<64x128xbf16>
    %c3 = arith.constant 3 : index
    %c0_37 = arith.constant 0 : index
    %c0_38 = arith.constant 0 : index
    %38 = vector.load %arg4[%c3, %c0_37, %c0_38] : memref<9x128x128xbf16, #tpu.memory_space<vmem>>, vector<1x128x128xbf16>
    %39 = vector.shape_cast %38 : vector<1x128x128xbf16> to vector<128x128xbf16>
    %cst_39 = arith.constant dense<0.000000e+00> : vector<64x128xf32>
    %40 = tpu.matmul %37, %39, %cst_39 {dimension_numbers = #tpu.dot_dimension_numbers<[1], [0], [0], [1], [0, 0, 1, 1], [], []>} : vector<64x128xbf16>, vector<128x128xbf16>, vector<64x128xf32> -> vector<64x128xf32>
    %41 = arith.addf %35, %40 : vector<64x128xf32>
    %c1_40 = arith.constant 1 : index
    %c1_41 = arith.constant 1 : index
    %c0_42 = arith.constant 0 : index
    %42 = vector.load %arg10[%c1_40, %c1_41, %c0_42] : memref<10x10x128xbf16, #tpu.memory_space<vmem>>, vector<8x8x128xbf16>
    %43 = vector.shape_cast %42 : vector<8x8x128xbf16> to vector<64x128xbf16>
    %c4 = arith.constant 4 : index
    %c0_43 = arith.constant 0 : index
    %c0_44 = arith.constant 0 : index
    %44 = vector.load %arg4[%c4, %c0_43, %c0_44] : memref<9x128x128xbf16, #tpu.memory_space<vmem>>, vector<1x128x128xbf16>
    %45 = vector.shape_cast %44 : vector<1x128x128xbf16> to vector<128x128xbf16>
    %cst_45 = arith.constant dense<0.000000e+00> : vector<64x128xf32>
    %46 = tpu.matmul %43, %45, %cst_45 {dimension_numbers = #tpu.dot_dimension_numbers<[1], [0], [0], [1], [0, 0, 1, 1], [], []>} : vector<64x128xbf16>, vector<128x128xbf16>, vector<64x128xf32> -> vector<64x128xf32>
    %47 = arith.addf %41, %46 : vector<64x128xf32>
    %c1_46 = arith.constant 1 : index
    %c2_47 = arith.constant 2 : index
    %c0_48 = arith.constant 0 : index
    %48 = vector.load %arg10[%c1_46, %c2_47, %c0_48] : memref<10x10x128xbf16, #tpu.memory_space<vmem>>, vector<8x8x128xbf16>
    %49 = vector.shape_cast %48 : vector<8x8x128xbf16> to vector<64x128xbf16>
    %c5 = arith.constant 5 : index
    %c0_49 = arith.constant 0 : index
    %c0_50 = arith.constant 0 : index
    %50 = vector.load %arg4[%c5, %c0_49, %c0_50] : memref<9x128x128xbf16, #tpu.memory_space<vmem>>, vector<1x128x128xbf16>
    %51 = vector.shape_cast %50 : vector<1x128x128xbf16> to vector<128x128xbf16>
    %cst_51 = arith.constant dense<0.000000e+00> : vector<64x128xf32>
    %52 = tpu.matmul %49, %51, %cst_51 {dimension_numbers = #tpu.dot_dimension_numbers<[1], [0], [0], [1], [0, 0, 1, 1], [], []>} : vector<64x128xbf16>, vector<128x128xbf16>, vector<64x128xf32> -> vector<64x128xf32>
    %53 = arith.addf %47, %52 : vector<64x128xf32>
    %c2_52 = arith.constant 2 : index
    %c0_53 = arith.constant 0 : index
    %c0_54 = arith.constant 0 : index
    %54 = vector.load %arg10[%c2_52, %c0_53, %c0_54] : memref<10x10x128xbf16, #tpu.memory_space<vmem>>, vector<8x8x128xbf16>
    %55 = vector.shape_cast %54 : vector<8x8x128xbf16> to vector<64x128xbf16>
    %c6 = arith.constant 6 : index
    %c0_55 = arith.constant 0 : index
    %c0_56 = arith.constant 0 : index
    %56 = vector.load %arg4[%c6, %c0_55, %c0_56] : memref<9x128x128xbf16, #tpu.memory_space<vmem>>, vector<1x128x128xbf16>
    %57 = vector.shape_cast %56 : vector<1x128x128xbf16> to vector<128x128xbf16>
    %cst_57 = arith.constant dense<0.000000e+00> : vector<64x128xf32>
    %58 = tpu.matmul %55, %57, %cst_57 {dimension_numbers = #tpu.dot_dimension_numbers<[1], [0], [0], [1], [0, 0, 1, 1], [], []>} : vector<64x128xbf16>, vector<128x128xbf16>, vector<64x128xf32> -> vector<64x128xf32>
    %59 = arith.addf %53, %58 : vector<64x128xf32>
    %c2_58 = arith.constant 2 : index
    %c1_59 = arith.constant 1 : index
    %c0_60 = arith.constant 0 : index
    %60 = vector.load %arg10[%c2_58, %c1_59, %c0_60] : memref<10x10x128xbf16, #tpu.memory_space<vmem>>, vector<8x8x128xbf16>
    %61 = vector.shape_cast %60 : vector<8x8x128xbf16> to vector<64x128xbf16>
    %c7 = arith.constant 7 : index
    %c0_61 = arith.constant 0 : index
    %c0_62 = arith.constant 0 : index
    %62 = vector.load %arg4[%c7, %c0_61, %c0_62] : memref<9x128x128xbf16, #tpu.memory_space<vmem>>, vector<1x128x128xbf16>
    %63 = vector.shape_cast %62 : vector<1x128x128xbf16> to vector<128x128xbf16>
    %cst_63 = arith.constant dense<0.000000e+00> : vector<64x128xf32>
    %64 = tpu.matmul %61, %63, %cst_63 {dimension_numbers = #tpu.dot_dimension_numbers<[1], [0], [0], [1], [0, 0, 1, 1], [], []>} : vector<64x128xbf16>, vector<128x128xbf16>, vector<64x128xf32> -> vector<64x128xf32>
    %65 = arith.addf %59, %64 : vector<64x128xf32>
    %c2_64 = arith.constant 2 : index
    %c2_65 = arith.constant 2 : index
    %c0_66 = arith.constant 0 : index
    %66 = vector.load %arg10[%c2_64, %c2_65, %c0_66] : memref<10x10x128xbf16, #tpu.memory_space<vmem>>, vector<8x8x128xbf16>
    %67 = vector.shape_cast %66 : vector<8x8x128xbf16> to vector<64x128xbf16>
    %c8 = arith.constant 8 : index
    %c0_67 = arith.constant 0 : index
    %c0_68 = arith.constant 0 : index
    %68 = vector.load %arg4[%c8, %c0_67, %c0_68] : memref<9x128x128xbf16, #tpu.memory_space<vmem>>, vector<1x128x128xbf16>
    %69 = vector.shape_cast %68 : vector<1x128x128xbf16> to vector<128x128xbf16>
    %cst_69 = arith.constant dense<0.000000e+00> : vector<64x128xf32>
    %70 = tpu.matmul %67, %69, %cst_69 {dimension_numbers = #tpu.dot_dimension_numbers<[1], [0], [0], [1], [0, 0, 1, 1], [], []>} : vector<64x128xbf16>, vector<128x128xbf16>, vector<64x128xf32> -> vector<64x128xf32>
    %71 = arith.addf %65, %70 : vector<64x128xf32>
    %72 = vector.shape_cast %71 : vector<64x128xf32> to vector<8x8x128xf32>
    %73 = arith.truncf %72 : vector<8x8x128xf32> to vector<8x8x128xbf16>
    %c0_70 = arith.constant 0 : index
    %c0_71 = arith.constant 0 : index
    %c0_72 = arith.constant 0 : index
    %c0_73 = arith.constant 0 : index
    %74 = vector.load %arg7[%c0_70, %c0_71, %c0_72, %c0_73] : memref<1x8x8x128xbf16, #tpu.memory_space<vmem>>, vector<1x8x8x128xbf16>
    %75 = vector.shape_cast %74 : vector<1x8x8x128xbf16> to vector<8x8x128xbf16>
    %76 = vector.shape_cast %73 : vector<8x8x128xbf16> to vector<1x8x8x128xbf16>
    tpu.vector_store %arg7[%c0_70, %c0_71, %c0_72, %c0_73], %76 {strides = array<i32>} : memref<1x8x8x128xbf16, #tpu.memory_space<vmem>>, vector<1x8x8x128xbf16>,
    %cst_74 = arith.constant dense<0.000000e+00> : vector<128xf32>
    %77 = vector.multi_reduction <add>, %71, %cst_74 [0] : vector<64x128xf32> to vector<128xf32>
    %78 = vector.shape_cast %77 : vector<128xf32> to vector<1x128xf32>
    %79 = arith.mulf %71, %71 : vector<64x128xf32>
    %cst_75 = arith.constant dense<0.000000e+00> : vector<128xf32>
    %80 = vector.multi_reduction <add>, %79, %cst_75 [0] : vector<64x128xf32> to vector<128xf32>
    %81 = vector.shape_cast %80 : vector<128xf32> to vector<1x128xf32>
    %c0_76 = arith.constant 0 : index
    %c0_77 = arith.constant 0 : index
    %c0_78 = arith.constant 0 : index
    %c0_79 = arith.constant 0 : index
    %82 = vector.load %arg5[%c0_76, %c0_77, %c0_78, %c0_79] : memref<1x8x8x4xbf16, #tpu.memory_space<vmem>>, vector<1x8x8x4xbf16>
    %83 = vector.shape_cast %82 : vector<1x8x8x4xbf16> to vector<8x8x4xbf16>
    %84 = vector.shape_cast %83 : vector<8x8x4xbf16> to vector<64x4xbf16>
    %c0_80 = arith.constant 0 : index
    %c0_81 = arith.constant 0 : index
    %85 = vector.load %arg6[%c0_80, %c0_81] : memref<4x128xbf16, #tpu.memory_space<vmem>>, vector<4x128xbf16>
    %cst_82 = arith.constant dense<0.000000e+00> : vector<64x128xf32>
    %86 = tpu.matmul %84, %85, %cst_82 {dimension_numbers = #tpu.dot_dimension_numbers<[1], [0], [0], [1], [0, 0, 1, 1], [], []>} : vector<64x4xbf16>, vector<4x128xbf16>, vector<64x128xf32> -> vector<64x128xf32>
    %87 = vector.shape_cast %86 : vector<64x128xf32> to vector<8x8x128xf32>
    %88 = arith.truncf %87 : vector<8x8x128xf32> to vector<8x8x128xbf16>
    %c0_83 = arith.constant 0 : index
    %c0_84 = arith.constant 0 : index
    %c0_85 = arith.constant 0 : index
    %c0_86 = arith.constant 0 : index
    %89 = vector.load %arg8[%c0_83, %c0_84, %c0_85, %c0_86] : memref<1x8x8x128xbf16, #tpu.memory_space<vmem>>, vector<1x8x8x128xbf16>
    %90 = vector.shape_cast %89 : vector<1x8x8x128xbf16> to vector<8x8x128xbf16>
    %91 = vector.shape_cast %88 : vector<8x8x128xbf16> to vector<1x8x8x128xbf16>
    tpu.vector_store %arg8[%c0_83, %c0_84, %c0_85, %c0_86], %91 {strides = array<i32>} : memref<1x8x8x128xbf16, #tpu.memory_space<vmem>>, vector<1x8x8x128xbf16>,
    %cst_87 = arith.constant dense<0.000000e+00> : vector<128xf32>
    %92 = vector.multi_reduction <add>, %86, %cst_87 [0] : vector<64x128xf32> to vector<128xf32>
    %93 = vector.shape_cast %92 : vector<128xf32> to vector<1x128xf32>
    %94 = arith.mulf %86, %86 : vector<64x128xf32>
    %cst_88 = arith.constant dense<0.000000e+00> : vector<128xf32>
    %95 = vector.multi_reduction <add>, %94, %cst_88 [0] : vector<64x128xf32> to vector<128xf32>
    %96 = vector.shape_cast %95 : vector<128xf32> to vector<1x128xf32>
    %97 = tpu.concatenate %78, %81, %93, %96 in 0 : vector<1x128xf32>, vector<1x128xf32>, vector<1x128xf32>, vector<1x128xf32> -> vector<4x128xf32>
    %c0_89 = arith.constant 0 : index
    %c0_90 = arith.constant 0 : index
    %c0_91 = arith.constant 0 : index
    %98 = vector.load %arg9[%c0_89, %c0_90, %c0_91] : memref<1x4x128xf32, #tpu.memory_space<vmem>>, vector<1x4x128xf32>
    %99 = vector.shape_cast %98 : vector<1x4x128xf32> to vector<4x128xf32>
    %100 = vector.shape_cast %97 : vector<4x128xf32> to vector<1x4x128xf32>
    tpu.vector_store %arg9[%c0_89, %c0_90, %c0_91], %100 {strides = array<i32>} : memref<1x4x128xf32, #tpu.memory_space<vmem>>, vector<1x4x128xf32>,
    return
  }
  func.func @transform_0(%arg0: i32) -> (i32, i32, i32, i32) {
    %c0_i32 = arith.constant 0 : i32
    %c0_i32_0 = arith.constant 0 : i32
    %c0_i32_1 = arith.constant 0 : i32
    %c0_i32_2 = arith.constant 0 : i32
    return %arg0, %c0_i32, %c0_i32_0, %c0_i32_1 : i32, i32, i32, i32
  }
  func.func @transform_1(%arg0: i32) -> (i32, i32) {
    %c0_i32 = arith.constant 0 : i32
    %c0_i32_0 = arith.constant 0 : i32
    %c0_i32_1 = arith.constant 0 : i32
    return %c0_i32, %c0_i32_0 : i32, i32
  }
  func.func @transform_2(%arg0: i32) -> (i32, i32) {
    %c0_i32 = arith.constant 0 : i32
    %c0_i32_0 = arith.constant 0 : i32
    %c0_i32_1 = arith.constant 0 : i32
    return %c0_i32, %c0_i32_0 : i32, i32
  }
  func.func @transform_3(%arg0: i32) -> (i32, i32, i32) {
    %c0_i32 = arith.constant 0 : i32
    %c0_i32_0 = arith.constant 0 : i32
    %c0_i32_1 = arith.constant 0 : i32
    %c0_i32_2 = arith.constant 0 : i32
    return %c0_i32, %c0_i32_0, %c0_i32_1 : i32, i32, i32
  }
  func.func @transform_4(%arg0: i32) -> (i32, i32, i32, i32) {
    %c0_i32 = arith.constant 0 : i32
    %c0_i32_0 = arith.constant 0 : i32
    %c0_i32_1 = arith.constant 0 : i32
    %c0_i32_2 = arith.constant 0 : i32
    return %arg0, %c0_i32, %c0_i32_0, %c0_i32_1 : i32, i32, i32, i32
  }
  func.func @transform_5(%arg0: i32) -> (i32, i32) {
    %c0_i32 = arith.constant 0 : i32
    %c0_i32_0 = arith.constant 0 : i32
    %c0_i32_1 = arith.constant 0 : i32
    return %c0_i32, %c0_i32_0 : i32, i32
  }
  func.func @transform_6(%arg0: i32) -> (i32, i32, i32, i32) {
    %c0_i32 = arith.constant 0 : i32
    %c0_i32_0 = arith.constant 0 : i32
    %c0_i32_1 = arith.constant 0 : i32
    %c0_i32_2 = arith.constant 0 : i32
    return %arg0, %c0_i32, %c0_i32_0, %c0_i32_1 : i32, i32, i32, i32
  }
  func.func @transform_7(%arg0: i32) -> (i32, i32, i32, i32) {
    %c0_i32 = arith.constant 0 : i32
    %c0_i32_0 = arith.constant 0 : i32
    %c0_i32_1 = arith.constant 0 : i32
    %c0_i32_2 = arith.constant 0 : i32
    return %arg0, %c0_i32, %c0_i32_0, %c0_i32_1 : i32, i32, i32, i32
  }
  func.func @transform_8(%arg0: i32) -> (i32, i32, i32) {
    %c0_i32 = arith.constant 0 : i32
    %c0_i32_0 = arith.constant 0 : i32
    %c0_i32_1 = arith.constant 0 : i32
    return %arg0, %c0_i32, %c0_i32_0 : i32, i32, i32
  }
}

module attributes {stable_mosaic.version = 11 : i64} {
  func.func @_epilogue_proj_kernel(%arg0: i32, %arg1: memref<1x8x8x128xbf16, #tpu.memory_space<vmem>>, %arg2: memref<1x8x8x128xbf16, #tpu.memory_space<vmem>>, %arg3: memref<1x128xf32, #tpu.memory_space<vmem>>, %arg4: memref<1x128xf32, #tpu.memory_space<vmem>>, %arg5: memref<1x128xf32, #tpu.memory_space<vmem>>, %arg6: memref<1x128xf32, #tpu.memory_space<vmem>>, %arg7: memref<1x8x8x128xf32, #tpu.memory_space<vmem>>) attributes {dimension_semantics = [#tpu.dimension_semantics<parallel>], iteration_bounds = array<i64: 2>, scalar_prefetch = 0 : i64, scratch_operands = 0 : i64, tpu.core_type = #tpu.core_type<tc>, window_params = [{transform_indices = @transform_0, window_bounds = array<i64: 1, 8, 8, 128>}, {transform_indices = @transform_1, window_bounds = array<i64: 1, 8, 8, 128>}, {pipeline_mode = #tpu.pipeline_mode<synchronous>, transform_indices = @transform_2, window_bounds = array<i64: 1, 128>}, {pipeline_mode = #tpu.pipeline_mode<synchronous>, transform_indices = @transform_3, window_bounds = array<i64: 1, 128>}, {pipeline_mode = #tpu.pipeline_mode<synchronous>, transform_indices = @transform_4, window_bounds = array<i64: 1, 128>}, {pipeline_mode = #tpu.pipeline_mode<synchronous>, transform_indices = @transform_5, window_bounds = array<i64: 1, 128>}, {transform_indices = @transform_6, window_bounds = array<i64: 1, 8, 8, 128>}]} {
    %c0 = arith.constant 0 : index
    %c0_0 = arith.constant 0 : index
    %c0_1 = arith.constant 0 : index
    %c0_2 = arith.constant 0 : index
    %0 = vector.load %arg1[%c0, %c0_0, %c0_1, %c0_2] : memref<1x8x8x128xbf16, #tpu.memory_space<vmem>>, vector<1x8x8x128xbf16>
    %1 = vector.shape_cast %0 : vector<1x8x8x128xbf16> to vector<8x8x128xbf16>
    %2 = arith.extf %1 : vector<8x8x128xbf16> to vector<8x8x128xf32>
    %c0_3 = arith.constant 0 : index
    %c0_4 = arith.constant 0 : index
    %3 = vector.load %arg3[%c0_3, %c0_4] : memref<1x128xf32, #tpu.memory_space<vmem>>, vector<1x128xf32>
    %4 = vector.shape_cast %3 : vector<1x128xf32> to vector<1x1x128xf32>
    %5 = vector.broadcast %4 : vector<1x1x128xf32> to vector<8x8x128xf32>
    %6 = arith.mulf %2, %5 : vector<8x8x128xf32>
    %c0_5 = arith.constant 0 : index
    %c0_6 = arith.constant 0 : index
    %7 = vector.load %arg4[%c0_5, %c0_6] : memref<1x128xf32, #tpu.memory_space<vmem>>, vector<1x128xf32>
    %8 = vector.shape_cast %7 : vector<1x128xf32> to vector<1x1x128xf32>
    %9 = vector.broadcast %8 : vector<1x1x128xf32> to vector<8x8x128xf32>
    %10 = arith.addf %6, %9 : vector<8x8x128xf32>
    %c0_7 = arith.constant 0 : index
    %c0_8 = arith.constant 0 : index
    %c0_9 = arith.constant 0 : index
    %c0_10 = arith.constant 0 : index
    %11 = vector.load %arg2[%c0_7, %c0_8, %c0_9, %c0_10] : memref<1x8x8x128xbf16, #tpu.memory_space<vmem>>, vector<1x8x8x128xbf16>
    %12 = vector.shape_cast %11 : vector<1x8x8x128xbf16> to vector<8x8x128xbf16>
    %13 = arith.extf %12 : vector<8x8x128xbf16> to vector<8x8x128xf32>
    %c0_11 = arith.constant 0 : index
    %c0_12 = arith.constant 0 : index
    %14 = vector.load %arg5[%c0_11, %c0_12] : memref<1x128xf32, #tpu.memory_space<vmem>>, vector<1x128xf32>
    %15 = vector.shape_cast %14 : vector<1x128xf32> to vector<1x1x128xf32>
    %16 = vector.broadcast %15 : vector<1x1x128xf32> to vector<8x8x128xf32>
    %17 = arith.mulf %13, %16 : vector<8x8x128xf32>
    %18 = arith.addf %10, %17 : vector<8x8x128xf32>
    %c0_13 = arith.constant 0 : index
    %c0_14 = arith.constant 0 : index
    %19 = vector.load %arg6[%c0_13, %c0_14] : memref<1x128xf32, #tpu.memory_space<vmem>>, vector<1x128xf32>
    %20 = vector.shape_cast %19 : vector<1x128xf32> to vector<1x1x128xf32>
    %21 = vector.broadcast %20 : vector<1x1x128xf32> to vector<8x8x128xf32>
    %22 = arith.addf %18, %21 : vector<8x8x128xf32>
    %cst = arith.constant 0.000000e+00 : f32
    %23 = vector.broadcast %cst : f32 to vector<8x8x128xf32>
    %24 = arith.maximumf %22, %23 : vector<8x8x128xf32>
    %c0_15 = arith.constant 0 : index
    %c0_16 = arith.constant 0 : index
    %c0_17 = arith.constant 0 : index
    %c0_18 = arith.constant 0 : index
    %25 = vector.load %arg7[%c0_15, %c0_16, %c0_17, %c0_18] : memref<1x8x8x128xf32, #tpu.memory_space<vmem>>, vector<1x8x8x128xf32>
    %26 = vector.shape_cast %25 : vector<1x8x8x128xf32> to vector<8x8x128xf32>
    %27 = vector.shape_cast %24 : vector<8x8x128xf32> to vector<1x8x8x128xf32>
    tpu.vector_store %arg7[%c0_15, %c0_16, %c0_17, %c0_18], %27 {strides = array<i32>} : memref<1x8x8x128xf32, #tpu.memory_space<vmem>>, vector<1x8x8x128xf32>,
    return
  }
  func.func @transform_0(%arg0: i32) -> (i32, i32, i32, i32) {
    %c0_i32 = arith.constant 0 : i32
    %c0_i32_0 = arith.constant 0 : i32
    %c0_i32_1 = arith.constant 0 : i32
    %c0_i32_2 = arith.constant 0 : i32
    return %arg0, %c0_i32, %c0_i32_0, %c0_i32_1 : i32, i32, i32, i32
  }
  func.func @transform_1(%arg0: i32) -> (i32, i32, i32, i32) {
    %c0_i32 = arith.constant 0 : i32
    %c0_i32_0 = arith.constant 0 : i32
    %c0_i32_1 = arith.constant 0 : i32
    %c0_i32_2 = arith.constant 0 : i32
    return %arg0, %c0_i32, %c0_i32_0, %c0_i32_1 : i32, i32, i32, i32
  }
  func.func @transform_2(%arg0: i32) -> (i32, i32) {
    %c0_i32 = arith.constant 0 : i32
    %c0_i32_0 = arith.constant 0 : i32
    %c0_i32_1 = arith.constant 0 : i32
    return %c0_i32, %c0_i32_0 : i32, i32
  }
  func.func @transform_3(%arg0: i32) -> (i32, i32) {
    %c0_i32 = arith.constant 0 : i32
    %c0_i32_0 = arith.constant 0 : i32
    %c0_i32_1 = arith.constant 0 : i32
    return %c0_i32, %c0_i32_0 : i32, i32
  }
  func.func @transform_4(%arg0: i32) -> (i32, i32) {
    %c0_i32 = arith.constant 0 : i32
    %c0_i32_0 = arith.constant 0 : i32
    %c0_i32_1 = arith.constant 0 : i32
    return %c0_i32, %c0_i32_0 : i32, i32
  }
  func.func @transform_5(%arg0: i32) -> (i32, i32) {
    %c0_i32 = arith.constant 0 : i32
    %c0_i32_0 = arith.constant 0 : i32
    %c0_i32_1 = arith.constant 0 : i32
    return %c0_i32, %c0_i32_0 : i32, i32
  }
  func.func @transform_6(%arg0: i32) -> (i32, i32, i32, i32) {
    %c0_i32 = arith.constant 0 : i32
    %c0_i32_0 = arith.constant 0 : i32
    %c0_i32_1 = arith.constant 0 : i32
    %c0_i32_2 = arith.constant 0 : i32
    return %arg0, %c0_i32, %c0_i32_0, %c0_i32_1 : i32, i32, i32, i32
  }
}

</mosaic_0001>

<bundles_post_ra>
// kernel: residual_block_forward.3
= control target key start
LH: loop header
LB: loop body
LE: loop exit
PB: predicated region body
PF: predicated region fallthrough
CT: control target
= control target key end

     0   :  { %s1248_s12 = smov 0   ;;  %s1427_s0 = inlined_call_operand.vmem [shape: bf16[2,9,9,16], index: 0, kind: input, shape index: {}]   ;;  %s1428_s1 = inlined_call_operand.vmem [shape: bf16[4,16,128], index: 1, kind: input, shape index: {}]   ;;  %s1429_s2 = inlined_call_operand.vmem [shape: bf16[2,8,8,128], index: 2, kind: output, shape index: {0}]   ;;  %s1430_s3 = inlined_call_operand.vmem [shape: f32[2,2,128], index: 3, kind: output, shape index: {1}]  }
   0x1 LB: > { %s1014_s13 = sadd.s32 4294967295, %s1226_s12   ;;  %p1018_p0 = scmp.ge.s32.totalorder %s1226_s12, 1  ;;  %s1226_s12 = sphi %s1248_s12, %s14_s12  }
   0x2   : > { %p140_p1 = scmp.lt.s32.totalorder %s1226_s12, 3 }
   0x4   : > { %p141_p2 = pnand %p1018_p0, %p140_p1 }
   0x5   : > { %v1208_v0 = vld [vmem:[%s1428_s1 + $0x10] sm:$0xff] (!%p141_p2)   ;;  %p168_p3 = scmp.lt.s32.totalorder (!%p141_p2), %s1014_s13, 1  ;;  %v1211_v1 = vld [vmem:[%s1428_s1 + $0x8] sm:$0xff] (!%p141_p2)   ;;  %v1267_v2 = vld [vmem:[%s1428_s1] sm:$0xff] (!%p141_p2)   ;;  %vm337_vm0 = vcmask (!%p141_p2), 130048   ;;  %vm925_vm4 = vcmask (!%p141_p2), 1040384  }
   0x6   : > { %144 = sbr.rel (%p141_p2) target bundleno = 311 (0x137), region = 28  ;;  %1155 = vmatprep.subr.bf16.mxu0 (!%p141_p2), %v1208_v0  ;;  %1135 = vmatprep.subr.bf16.mxu1 (!%p141_p2), %v1211_v1  ;;  %v1215_v3 = vld [vmem:[%s1428_s1 + $0x18] sm:$0xff] (!%p141_p2)   ;;  %vm201_vm1 = vsmask.f32 (!%p141_p2), 3328  ;;  %vm202_vm2 = vsmask.f32 (!%p141_p2), 7440 }
   0x7   : > { %1156 = vmatpush3.bf16.msra.mxu0 (!%p141_p2), %v1208_v0  ;;  %1136 = vmatpush3.bf16.msra.mxu1 (!%p141_p2), %v1211_v1  ;;  %vm1310_vm3 = vmor (!%p141_p2), %vm201_vm1, %vm202_vm2 }
   0x8   : > { %1145 = vmatprep.subr.bf16.mxu1 (!%p141_p2), %v1267_v2  ;;  %1165 = vmatprep.subr.bf16.mxu0 (!%p141_p2), %v1215_v3 }
   0xd   : > { %s1434_s13 = smov (!%p168_p3, %s1014_s13), 1 }
   0xe   : > { %s1199_s20 = smul.u32 72, %s1434_s13  ;;  %s1091_s26 = sshll.u32 %s1434_s13, 5 }
   0xf   : > { %s1414_s29 = scalar_lea.vmem %s1429_s2, %s1091_s26  ;;  %s1022_s30 = sshll.u32 %s1434_s13, 1 }
  0x10   : > { %s1277_s25 = scalar_lea.vmem %s1427_s0, %s1199_s20  ;;  %s181_s6 = scalar_lea.vmem %s1430_s3, %s1022_s30 }
  0x11   : > { %v1209_v4 = vld [vmem:[%s1277_s25 + $0x8] ss:$8 sps:$4 sm:$0xff]   ;;  %v1210_v5 = vld [vmem:[%s1277_s25 + $0x18] ss:$8 sps:$4 sm:$0xff]   ;;  %v193_v9 = vld [vmem:[%s1277_s25 + $0x4] sm:$0x1] }
  0x12   : > { %1157 = vmatprep.mubr.msk.bf16.mxu0 %vm337_vm0, %v1209_v4  ;;  %v1212_v6 = vld [vmem:[%s1277_s25 + $0x28] ss:$8 sps:$4 sm:$0xff]   ;;  %v1285_v7 = vld [vmem:[%s1277_s25] sm:$0xf]  ;;  %v194_v10 = vld [vmem:[%s1277_s25 + $0xc] sm:$0x1] }
  0x13   : > { %1158 = vmatmul.mubr.msk.bf16.vlgmr.msra.gmra.mrb[0].mxu0 %vm337_vm0, %v1210_v5  ;;  %v1288_v8 = vld [vmem:[%s1277_s25 + $0x8] sm:$0xf]  ;;  %v205_v11 = vshrl.u32 %v1285_v7, 16  ;;  %v208_v12 = vshll.u32 %v1285_v7, 16  ;;  %v214_v13 = vshll.u32 %v193_v9, 16  ;;  %v228_v16 = vshll.u32 %v194_v10, 16 }
  0x14   : > { %1161 = vmatprep.mubr.msk.bf16.mxu0 %vm337_vm0, %v1212_v6  ;;  %v219_v14 = vshrl.u32 %v1288_v8, 16  ;;  %1166 = vmatpush3.bf16.msra.mxu0 %v1215_v3  ;;  %v222_v15 = vshll.u32 %v1288_v8, 16  ;;  %v1214_v21 = vld [vmem:[%s1277_s25 + $0x38] ss:$8 sps:$4 sm:$0xff]   ;;  %v1299_v24 = vld [vmem:[%s1277_s25 + $0x10] sm:$0xf] }
  0x15   : > { %v207_v17 = vrot.slane %v205_v11, 4  ;;  %v210_v18 = vrot.slane %v208_v12, 5  ;;  %v216_v19 = vrot.slane %v214_v13, 5  ;;  %v230_v23 = vrot.slane %v228_v16, 5  ;;  %v1302_v25 = vld [vmem:[%s1277_s25 + $0x18] sm:$0xf] }
  0x16   : > { %v221_v20 = vrot.slane %v219_v14, 4  ;;  %v224_v22 = vrot.slane %v222_v15, 5  ;;  %v195_v27 = vld [vmem:[%s1277_s25 + $0x14] sm:$0x1]  ;;  %v196_v28 = vld [vmem:[%s1277_s25 + $0x1c] sm:$0x1] }
  0x17   : > { %v211_v26 = vor.u32 %v210_v18, %v207_v17  ;;  %v233_v29 = vshrl.u32 %v1299_v24, 16  ;;  %v236_v30 = vshll.u32 %v1299_v24, 16  ;;  %v242_v33 = vshll.u32 %v195_v27, 16  ;;  %v1062_v36 = vld [vmem:[%s1277_s25 + $0x8] sm:$0xf] }
  0x18   : > { %v225_v32 = vor.u32 %v224_v22, %v221_v20  ;;  %v247_v34 = vshrl.u32 %v1302_v25, 16  ;;  %v250_v35 = vshll.u32 %v1302_v25, 16  ;;  %v256_v40 = vshll.u32 %v196_v28, 16  ;;  %v1063_v41 = vld [vmem:[%s1277_s25 + $0xc] sm:$0x1] }
  0x19   : > { %v212_v37 = vrot.slane %v211_v26, 4  ;;  %v235_v38 = vrot.slane %v233_v29, 4  ;;  %v238_v39 = vrot.slane %v236_v30, 5  ;;  %v244_v43 = vrot.slane %v242_v33, 5  ;;  %v1064_v46 = vld [vmem:[%s1277_s25 + $0x10] sm:$0xf] }
  0x1a   : > { %v226_v42 = vrot.slane %v225_v32, 4  ;;  %v249_v44 = vrot.slane %v247_v34, 4  ;;  %v252_v45 = vrot.slane %v250_v35, 5  ;;  %v258_v49 = vrot.slane %v256_v40, 5  ;;  %v1065_v53 = vld [vmem:[%s1277_s25 + $0x14] sm:$0x1] }
  0x1b   : > { %1162 = vmatmul.mubr.msk.bf16.gmra.mrb[4].mxu0 %vm337_vm0, %v1214_v21  ;;  %v217_v47 = vsel %vm1310_vm3, %v212_v37, %v216_v19  ;;  %v239_v48 = vor.u32 %v238_v39, %v235_v38  ;;  %v658_v50 = vshrl.u32 %v1062_v36, 16  ;;  %v661_v54 = vshll.u32 %v1062_v36, 16  ;;  %v1326_v56 = vld [vmem:[%s1277_s25 + $0x20] sm:$0xf]  ;;  %v197_v1 = vld [vmem:[%s1277_s25 + $0x24] sm:$0x1] }
  0x1c   : > { %v231_v51 = vsel %vm1310_vm3, %v226_v42, %v230_v23  ;;  %v253_v52 = vor.u32 %v252_v45, %v249_v44  ;;  %v667_v55 = vshll.u32 %v1063_v41, 16  ;;  %v672_v60 = vshrl.u32 %v1064_v46, 16  ;;  %v1333_v6 = vld [vmem:[%s1277_s25 + $0x28] sm:$0xf]  ;;  %v198_v13 = vld [vmem:[%s1277_s25 + $0x2c] sm:$0x1] }
  0x1d   : > { %v1025_v57 = vcombine.low %v217_v47, %v231_v51  ;;  %v240_v58 = vrot.slane %v239_v48, 4  ;;  %v660_v59 = vrot.slane %v658_v50, 4  ;;  %v663_v62 = vrot.slane %v661_v54, 5  ;;  %v1066_v15 = vld [vmem:[%s1277_s25 + $0x18] sm:$0xf] }
  0x1e   : > { %v254_v61 = vrot.slane %v253_v52, 4  ;;  %v669_v63 = vrot.slane %v667_v55, 5  ;;  %v675_v0 = vshll.u32 %v1064_v46, 16  ;;  %v674_v4 = vrot.slane %v672_v60, 4  ;;  %v1067_v26 = vld [vmem:[%s1277_s25 + $0x1c] sm:$0x1] }
  0x1f   : > { %1137 = vmatprep.mubr.msk.bf16.mxu1 %vm337_vm0, %v1025_v57  ;;  %v245_v3 = vsel %vm1310_vm3, %v240_v58, %v244_v43  ;;  %v681_v5 = vshll.u32 %v1065_v53, 16  ;;  %v261_v9 = vshrl.u32 %v1326_v56, 16  ;;  %v664_v11 = vor.u32 %v663_v62, %v660_v59  ;;  %v1068_v30 = vld [vmem:[%s1277_s25 + $0x20] sm:$0xf]  ;;  %v1069_v39 = vld [vmem:[%s1277_s25 + $0x24] sm:$0x1] }
  0x20   : > { %v259_v10 = vsel %vm1310_vm3, %v254_v61, %v258_v49  ;;  %v677_v12 = vrot.slane %v675_v0, 5  ;;  %v264_v14 = vshll.u32 %v1326_v56, 16  ;;  %v270_v19 = vshll.u32 %v197_v1, 16  ;;  %v1356_v50 = vld [vmem:[%s1277_s25 + $0x38] sm:$0xf] }
  0x21   : > { %v1026_v16 = vcombine.low %v245_v3, %v259_v10  ;;  %v683_v17 = vrot.slane %v681_v5, 5  ;;  %v263_v18 = vrot.slane %v261_v9, 4  ;;  %v665_v20 = vrot.slane %v664_v11, 4  ;;  %v199_v51 = vld [vmem:[%s1277_s25 + $0x34] sm:$0x1] }
  0x22   : > { %v678_v21 = vor.u32 %v677_v12, %v674_v4  ;;  %v266_v22 = vrot.slane %v264_v14, 5  ;;  %v275_v23 = vshrl.u32 %v1333_v6, 16  ;;  %v272_v27 = vrot.slane %v270_v19, 5  ;;  %v200_v62 = vld [vmem:[%s1277_s25 + $0x3c] sm:$0x1] }
  0x23   : > { %1138 = vmatmul.mubr.msk.bf16.vlgmr.msra.gmra.mrb[0].mxu1 %vm337_vm0, %v1026_v16  ;;  %v278_v28 = vshll.u32 %v1333_v6, 16  ;;  %v284_v29 = vshll.u32 %v198_v13, 16  ;;  %v686_v32 = vshrl.u32 %v1066_v15, 16  ;;  %v670_v33 = vsel %vm1310_vm3, %v665_v20, %v669_v63  ;;  %v1070_v10 = vld [vmem:[%s1277_s25 + $0x28] sm:$0xf] }
  0x24   : > { %1146 = vmatpush3.bf16.msra.mxu1 %v1267_v2  ;;  %v679_v34 = vrot.slane %v678_v21, 4  ;;  %v267_v35 = vor.u32 %v266_v22, %v263_v18  ;;  %v277_v36 = vrot.slane %v275_v23, 4  ;;  %v689_v41 = vshll.u32 %v1066_v15, 16  ;;  %v1353_v2 = vld [vmem:[%s1277_s25 + $0x30] sm:$0xf] }
  0x25   : > { %v280_v37 = vrot.slane %v278_v28, 5  ;;  %v286_v38 = vrot.slane %v284_v29, 5  ;;  %v688_v40 = vrot.slane %v686_v32, 4  ;;  %v695_v44 = vshll.u32 %v1067_v26, 16  ;;  %v1071_v11 = vld [vmem:[%s1277_s25 + $0x2c] sm:$0x1] }
  0x26   : > { %v684_v42 = vsel %vm1310_vm3, %v679_v34, %v683_v17  ;;  %v268_v43 = vrot.slane %v267_v35, 4  ;;  %v700_v45 = vshrl.u32 %v1068_v30, 16  ;;  %v691_v48 = vrot.slane %v689_v41, 5  ;;  %v1072_v15 = vld [vmem:[%s1277_s25 + $0x30] sm:$0xf] }
  0x27   : > { %v1080_v46 = vcombine.low %v670_v33, %v684_v42  ;;  %v281_v47 = vor.u32 %v280_v37, %v277_v36  ;;  %v703_v49 = vshll.u32 %v1068_v30, 16  ;;  %v697_v53 = vrot.slane %v695_v44, 5  ;;  %v1073_v22 = vld [vmem:[%s1277_s25 + $0x34] sm:$0x1]  ;;  %v1074_v30 = vld [vmem:[%s1277_s25 + $0x38] sm:$0xf] }
  0x28   : > { %v273_v52 = vsel %vm1310_vm3, %v268_v43, %v272_v27  ;;  %v702_v54 = vrot.slane %v700_v45, 4  ;;  %v709_v55 = vshll.u32 %v1069_v39, 16  ;;  %v692_v58 = vor.u32 %v691_v48, %v688_v40  ;;  %v1075_v36 = vld [vmem:[%s1277_s25 + $0x3c] sm:$0x1]  ;;  %v1076_v41 = vld [vmem:[%s1277_s25 + $0x40] sm:$0xf] }
  0x29   : > { %1167 = vmatprep.mubr.msk.bf16.mxu0 %vm337_vm0, %v1080_v46  ;;  %v282_v57 = vrot.slane %v281_v47, 4  ;;  %v705_v59 = vrot.slane %v703_v49, 5  ;;  %v289_v60 = vshrl.u32 %v1353_v2, 16  ;;  %v292_v63 = vshll.u32 %v1353_v2, 16 }
  0x2a   : > { %v711_v61 = vrot.slane %v709_v55, 5  ;;  %v298_v0 = vshll.u32 %v199_v51, 16  ;;  %v303_v1 = vshrl.u32 %v1356_v50, 16  ;;  %v693_v4 = vrot.slane %v692_v58, 4 }
  0x2b   : > { %v287_v3 = vsel %vm1310_vm3, %v282_v57, %v286_v38  ;;  %v706_v5 = vor.u32 %v705_v59, %v702_v54  ;;  %v291_v9 = vrot.slane %v289_v60, 4  ;;  %v294_v13 = vrot.slane %v292_v63, 5 }
  0x2c   : > { %v1027_v12 = vcombine.low %v273_v52, %v287_v3  ;;  %v305_v14 = vrot.slane %v303_v1, 4  ;;  %v1034_v16 = vcombine.low %v1285_v7, %v1288_v8  ;;  %v698_v17 = vsel %vm1310_vm3, %v693_v4, %v697_v53  ;;  %v1077_v52 = vld [vmem:[%s1277_s25 + $0x44] sm:$0x1] }
  0x2d   : > { %v707_v18 = vrot.slane %v706_v5, 4  ;;  %v306_v19 = vshll.u32 %v1356_v50, 16  ;;  %v312_v20 = vshll.u32 %v200_v62, 16  ;;  %v295_v21 = vor.u32 %v294_v13, %v291_v9 }
  0x2e   : > { %1141 = vmatprep.mubr.msk.bf16.mxu1 %vm337_vm0, %v1027_v12  ;;  %v714_v23 = vshrl.u32 %v1070_v10, 16  ;;  %v717_v26 = vshll.u32 %v1070_v10, 16  ;;  %v723_v27 = vshll.u32 %v1071_v11, 16  ;;  %v300_v7 = vrot.slane %v298_v0, 5 }
  0x2f   : > { %v712_v28 = vsel %vm1310_vm3, %v707_v18, %v711_v61  ;;  %v308_v8 = vrot.slane %v306_v19, 5  ;;  %v728_v29 = vshrl.u32 %v1072_v15, 16  ;;  %v296_v33 = vrot.slane %v295_v21, 4 }
  0x30   : > { %v1081_v32 = vcombine.low %v698_v17, %v712_v28  ;;  %v716_v34 = vrot.slane %v714_v23, 4  ;;  %v719_v35 = vrot.slane %v717_v26, 5  ;;  %v314_v38 = vrot.slane %v312_v20, 5 }
  0x31   : > { %v309_v37 = vor.u32 %v308_v8, %v305_v14  ;;  %v730_v39 = vrot.slane %v728_v29, 4  ;;  %v731_v40 = vshll.u32 %v1072_v15, 16  ;;  %v725_v43 = vrot.slane %v723_v27, 5 }
  0x32   : > { %1168 = vmatmul.mubr.msk.bf16.vlgmr.msra.gmra.mrb[0].mxu0 %vm337_vm0, %v1081_v32  ;;  %v720_v42 = vor.u32 %v719_v35, %v716_v34  ;;  %v737_v44 = vshll.u32 %v1073_v22, 16  ;;  %v742_v45 = vshrl.u32 %v1074_v30, 16  ;;  %v301_v46 = vsel %vm1310_vm3, %v296_v33, %v300_v7 }
  0x33   : > { %v310_v47 = vrot.slane %v309_v37, 4  ;;  %v733_v48 = vrot.slane %v731_v40, 5  ;;  %v745_v49 = vshll.u32 %v1074_v30, 16  ;;  %v751_v54 = vshll.u32 %v1075_v36, 16 }
  0x34   : > { %v721_v51 = vrot.slane %v720_v42, 4  ;;  %v744_v53 = vrot.slane %v742_v45, 4  ;;  %v756_v55 = vshrl.u32 %v1076_v41, 16  ;;  %v739_v59 = vrot.slane %v737_v44, 5 }
  0x35   : > { %v315_v57 = vsel %vm1310_vm3, %v310_v47, %v314_v38  ;;  %v734_v58 = vor.u32 %v733_v48, %v730_v39  ;;  %v747_v60 = vrot.slane %v745_v49, 5  ;;  %v759_v63 = vshll.u32 %v1076_v41, 16 }
  0x36   : > { %v1028_v61 = vcombine.low %v301_v46, %v315_v57  ;;  %v758_v62 = vrot.slane %v756_v55, 4  ;;  %v726_v0 = vsel %vm1310_vm3, %v721_v51, %v725_v43  ;;  %v765_v4 = vshll.u32 %v1077_v52, 16 }
  0x37   : > { %v735_v1 = vrot.slane %v734_v58, 4  ;;  %v748_v3 = vor.u32 %v747_v60, %v744_v53  ;;  %v753_v5 = vrot.slane %v751_v54, 5  ;;  %v761_v9 = vrot.slane %v759_v63, 5 }
  0x38   : > { %1142 = vmatmul.mubr.msk.bf16.gmra.mrb[4].mxu1 %vm337_vm0, %v1028_v61  ;;  %v767_v14 = vrot.slane %v765_v4, 5  ;;  %v1035_v18 = vcombine.low %v1299_v24, %v1302_v25  ;;  %v1036_v19 = vcombine.low %v1326_v56, %v1333_v6  ;;  %v1037_v21 = vcombine.low %v1353_v2, %v1356_v50 }
  0x39   : > { %v740_v10 = vsel %vm1310_vm3, %v735_v1, %v739_v59  ;;  %1147 = vmatprep.mubr.msk.bf16.mxu1 %vm337_vm0, %v1034_v16  ;;  %v749_v11 = vrot.slane %v748_v3, 4  ;;  %v762_v13 = vor.u32 %v761_v9, %v758_v62 }
  0x3a   : > { %v1082_v12 = vcombine.low %v726_v0, %v740_v10 }
  0x3b   : > { %v754_v15 = vsel %vm1310_vm3, %v749_v11, %v753_v5  ;;  %v763_v17 = vrot.slane %v762_v13, 4 }
  0x3c   : > { %1171 = vmatprep.mubr.msk.bf16.mxu0 %vm337_vm0, %v1082_v12 }
  0x3d   : > { %v768_v16 = vsel %vm1310_vm3, %v763_v17, %v767_v14 }
  0x3e   : > { %v1083_v20 = vcombine.low %v754_v15, %v768_v16 }
  0x40   : > { %1148 = vmatmul.mubr.msk.bf16.vlgmr.msra.gmra.mrb[0].mxu1 %vm337_vm0, %v1035_v18  ;;  %1172 = vmatmul.mubr.msk.bf16.gmra.mrb[4].mxu0 %vm337_vm0, %v1083_v20 }
  0x41   : > { %1151 = vmatprep.mubr.msk.bf16.mxu1 %vm337_vm0, %v1036_v19 }
  0x48   : > { %1152 = vmatmul.mubr.msk.bf16.gmra.mrb[4].mxu1 %vm337_vm0, %v1037_v21 }
 0x105   : > { %v1169_v24 = vpop.f32.mrb[0].mxu0 }
 0x106   : > { %v836_v25 = vpop.f32.mrb[1].mxu0 }
 0x107   : > { %v1170_v22 = vpop.f32.mrb[2].mxu0 }
 0x108   : > { %v839_v56 = vpop.f32.mrb[3].mxu0 }
 0x113   : > { %v1149_v6 = vpop.f32.mrb[0].mxu1  ;;  %v1173_v31 = vpop.f32.mrb[4].mxu0 }
 0x114   : > { %v1175_v23 = vadd.f32 %v1169_v24, %v1149_v6  ;;  %v487_v26 = vpop.f32.mrb[1].mxu1  ;;  %v852_v27 = vpop.f32.mrb[5].mxu0 }
 0x115   : > { %v1176_v28 = vadd.f32 %v836_v25, %v487_v26  ;;  %v1150_v7 = vpop.f32.mrb[2].mxu1  ;;  %v1174_v8 = vpop.f32.mrb[6].mxu0 }
 0x116   : > { %v1177_v29 = vadd.f32 %v1170_v22, %v1150_v7  ;;  %v490_v30 = vpop.f32.mrb[3].mxu1  ;;  %v855_v2 = vpop.f32.mrb[7].mxu0  ;;  %v906_v37 = vmul.f32 %v1175_v23, %v1175_v23 }
 0x117   : > { %v1178_v50 = vadd.f32 %v839_v56, %v490_v30  ;;  %v904_v33 = vmul.f32 %v1176_v28, %v1176_v28 }
 0x118   : > { %v1100_v32 = vpack.c.bf16 %v1177_v29, %v1175_v23  ;;  %v907_v43 = vmul.f32 %v1177_v29, %v1177_v29 }
 0x119   : > { %v1095_v34 = vpack.c.bf16 %v1178_v50, %v1176_v28  ;;  %v891_v35 = vadd.f32 %v1178_v50, %v1176_v28  ;;  %v905_v36 = vmul.f32 %v1178_v50, %v1178_v50 }
 0x11a   : > { %1112 = vst [vmem:[%s1414_s29 + $0x8] sm:$0xff] %v1100_v32  }
 0x11b   : > { %1096 = vst [vmem:[%s1414_s29] sm:$0xff] %v1095_v34   ;;  %v892_v38 = vadd.f32 %v1175_v23, %v891_v35  ;;  %v912_v39 = vadd.f32 %v905_v36, %v904_v33  ;;  %v1153_v40 = vpop.f32.mrb[4].mxu1 }
 0x11c   : > { %v1179_v41 = vadd.f32 %v1173_v31, %v1153_v40  ;;  %v503_v42 = vpop.f32.mrb[5].mxu1 }
 0x11d   : > { %v913_v44 = vadd.f32 %v912_v39, %v906_v37  ;;  %v1180_v45 = vadd.f32 %v852_v27, %v503_v42  ;;  %v893_v46 = vadd.f32 %v1177_v29, %v892_v38  ;;  %v1154_v47 = vpop.f32.mrb[6].mxu1 }
 0x11e   : > { %v1181_v48 = vadd.f32 %v1174_v8, %v1154_v47  ;;  %v506_v49 = vpop.f32.mrb[7].mxu1  ;;  %v910_v61 = vmul.f32 %v1179_v41, %v1179_v41 }
 0x11f   : > { %v894_v51 = vadd.f32 %v1180_v45, %v893_v46  ;;  %v908_v52 = vmul.f32 %v1180_v45, %v1180_v45  ;;  %v914_v53 = vadd.f32 %v913_v44, %v907_v43  ;;  %v1182_v54 = vadd.f32 %v855_v2, %v506_v49 }
 0x120   : > { %v1110_v55 = vpack.c.bf16 %v1181_v48, %v1179_v41  ;;  %v911_v0 = vmul.f32 %v1181_v48, %v1181_v48 }
 0x121   : > { %v915_v57 = vadd.f32 %v914_v53, %v908_v52  ;;  %v1105_v58 = vpack.c.bf16 %v1182_v54, %v1180_v45  ;;  %v895_v59 = vadd.f32 %v1182_v54, %v894_v51  ;;  %v909_v60 = vmul.f32 %v1182_v54, %v1182_v54 }
 0x122   : > { %1114 = vst [vmem:[%s1414_s29 + $0x18] sm:$0xff] %v1110_v55  }
 0x123   : > { %1113 = vst [vmem:[%s1414_s29 + $0x10] sm:$0xff] %v1105_v58   ;;  %v896_v62 = vadd.f32 %v1179_v41, %v895_v59  ;;  %v916_v63 = vadd.f32 %v915_v57, %v909_v60 }
 0x125   : > { %v897_v1 = vadd.f32 %v1181_v48, %v896_v62  ;;  %v917_v3 = vadd.f32 %v916_v63, %v910_v61 }
 0x127   : > { %v898_v4 = vrot.slane %v897_v1, 4  ;;  %v918_v5 = vadd.f32 %v917_v3, %v911_v0 }
 0x129   : > { %v899_v9 = vadd.f32 %v898_v4, %v897_v1  ;;  %v919_v10 = vrot.slane %v918_v5, 4 }
 0x12b   : > { %v900_v11 = vrot.slane %v899_v9, 2  ;;  %v920_v12 = vadd.f32 %v919_v10, %v918_v5 }
 0x12d   : > { %v901_v13 = vadd.f32 %v900_v11, %v899_v9  ;;  %v921_v14 = vrot.slane %v920_v12, 2 }
 0x12f   : > { %v902_v15 = vrot.slane %v901_v13, 1  ;;  %v922_v17 = vadd.f32 %v921_v14, %v920_v12 }
 0x131   : > { %v923_v18 = vrot.slane %v922_v17, 1  ;;  %v903_v19 = vadd.f32 %v902_v15, %v901_v13 }
 0x133   : > { %v924_v16 = vadd.f32 %v923_v18, %v922_v17 }
 0x135   : > { %v926_v20 = vsel %vm925_vm4, %v903_v19, %v924_v16 }
 0x136   : > { %927 = vst [vmem:[%s181_s6] sm:$0x3] %v926_v20 }
 0x137 PF: > { %s14_s12 = sadd.s32 1, %s1226_s12  }
 0x138   : > { %p11_p4 = scmp.ge.s32.totalorder %s14_s12, 4  }
 0x13a   :  { %13 = sbr.rel (!%p11_p4) target bundleno = 1 (0x1), region = 74 }

// kernel: residual_block_forward.5
= control target key start
LH: loop header
LB: loop body
LE: loop exit
PB: predicated region body
PF: predicated region fallthrough
CT: control target
= control target key end

     0   :  { %s564_s21 = smov 0   ;;  %s652_s0 = inlined_call_operand.vmem [shape: bf16[2,8,8,128], index: 0, kind: input, shape index: {}]   ;;  %s653_s1 = inlined_call_operand.vmem [shape: bf16[2,8,8,128], index: 1, kind: input, shape index: {}]   ;;  %s654_s2 = inlined_call_operand.vmem [shape: f32[1,128], index: 2, kind: input, shape index: {}]   ;;  %s655_s3 = inlined_call_operand.vmem [shape: f32[1,128], index: 3, kind: input, shape index: {}]   ;;  %s656_s4 = inlined_call_operand.vmem [shape: f32[1,128], index: 4, kind: input, shape index: {}]   ;;  %s657_s5 = inlined_call_operand.vmem [shape: f32[1,128], index: 5, kind: input, shape index: {}]   ;;  %s658_s6 = inlined_call_operand.vmem [shape: f32[2,8,8,128], index: 6, kind: output, shape index: {}]  }
   0x1 LB: > { %s455_s22 = sadd.s32 4294967295, %s527_s21   ;;  %p459_p0 = scmp.ge.s32.totalorder %s527_s21, 1  ;;  %s527_s21 = sphi %s564_s21, %s16_s21  }
   0x2   : > { %p222_p1 = scmp.lt.s32.totalorder %s527_s21, 3 }
   0x4   : > { %p223_p2 = pnand %p459_p0, %p222_p1 }
   0x5   : > { %p257_p3 = scmp.lt.s32.totalorder (!%p223_p2), %s455_s22, 1  ;;  %v588_v0 = vld [vmem:[%s654_s2] ss:$0 sm:$0xff] (!%p223_p2) }
   0x6   : > { %226 = sbr.rel (%p223_p2) target bundleno = 42 (0x2a), region = 44  ;;  %v593_v1 = vld [vmem:[%s656_s4] ss:$0 sm:$0xff] (!%p223_p2) }
   0x7   : > { %v602_v10 = vld [vmem:[%s655_s3] ss:$0 sm:$0xff] (!%p223_p2) }
   0x8   : > { %v469_v29 = vld [vmem:[%s657_s5] ss:$0 sm:$0xff] (!%p223_p2) }
   0xd   : > { %s660_s22 = smov (!%p257_p3, %s455_s22), 1 }
   0xe   : > { %s472_s23 = sshll.u32 %s660_s22, 5  ;;  %s474_s14 = sshll.u32 %s660_s22, 6 }
   0xf   : > { %s578_s26 = scalar_lea.vmem %s652_s0, %s472_s23  ;;  %s583_s29 = scalar_lea.vmem %s653_s1, %s472_s23 }
  0x10   : > { %v476_v2 = vld [vmem:[%s578_s26] sm:$0xff]   ;;  %v507_v4 = vld [vmem:[%s578_s26 + $0x8] sm:$0xff]   ;;  %v508_v15 = vld [vmem:[%s578_s26 + $0x10] sm:$0xff]   ;;  %s632_s17 = scalar_lea.vmem %s658_s6, %s474_s14 }
  0x11   : > { %v492_v3 = vld [vmem:[%s583_s29] sm:$0xff]   ;;  %v477_v5 = vunpack.c.l.bf16 %v476_v2  ;;  %v478_v7 = vunpack.c.h.bf16 %v476_v2  ;;  %v510_v9 = vld [vmem:[%s583_s29 + $0x8] sm:$0xff]   ;;  %v481_v11 = vunpack.c.l.bf16 %v507_v4  ;;  %v482_v13 = vunpack.c.h.bf16 %v507_v4  ;;  %v511_v16 = vld [vmem:[%s583_s29 + $0x10] sm:$0xff]  }
  0x12   : > { %v493_v6 = vunpack.c.l.bf16 %v492_v3  ;;  %v494_v8 = vunpack.c.h.bf16 %v492_v3  ;;  %v497_v12 = vunpack.c.l.bf16 %v510_v9  ;;  %v498_v14 = vunpack.c.h.bf16 %v510_v9  ;;  %v509_v34 = vld [vmem:[%s578_s26 + $0x18] sm:$0xff]  }
  0x13   : > { %v295_v17 = vmul.f32 %v477_v5, %v588_v0  ;;  %v296_v19 = vmul.f32 %v478_v7, %v588_v0  ;;  %v297_v21 = vmul.f32 %v481_v11, %v588_v0  ;;  %v298_v23 = vmul.f32 %v482_v13, %v588_v0  ;;  %v512_v39 = vld [vmem:[%s583_s29 + $0x18] sm:$0xff]  }
  0x14   : > { %v341_v18 = vmul.f32 %v493_v6, %v593_v1  ;;  %v342_v20 = vmul.f32 %v494_v8, %v593_v1  ;;  %v343_v22 = vmul.f32 %v497_v12, %v593_v1  ;;  %v344_v24 = vmul.f32 %v498_v14, %v593_v1 }
  0x15   : > { %v310_v25 = vadd.f32 %v602_v10, %v295_v17  ;;  %v311_v26 = vadd.f32 %v602_v10, %v296_v19  ;;  %v485_v27 = vunpack.c.l.bf16 %v508_v15  ;;  %v501_v28 = vunpack.c.l.bf16 %v511_v16 }
  0x16   : > { %v312_v30 = vadd.f32 %v602_v10, %v297_v21  ;;  %v313_v31 = vadd.f32 %v602_v10, %v298_v23  ;;  %v486_v32 = vunpack.c.h.bf16 %v508_v15  ;;  %v502_v33 = vunpack.c.h.bf16 %v511_v16 }
  0x17   : > { %v349_v35 = vadd.f32 %v341_v18, %v310_v25  ;;  %v350_v36 = vadd.f32 %v342_v20, %v311_v26  ;;  %v299_v37 = vmul.f32 %v485_v27, %v588_v0  ;;  %v345_v38 = vmul.f32 %v501_v28, %v593_v1 }
  0x18   : > { %v351_v40 = vadd.f32 %v343_v22, %v312_v30  ;;  %v352_v41 = vadd.f32 %v344_v24, %v313_v31  ;;  %v300_v42 = vmul.f32 %v486_v32, %v588_v0  ;;  %v346_v43 = vmul.f32 %v502_v33, %v593_v1 }
  0x19   : > { %v364_v44 = vadd.f32 %v469_v29, %v349_v35  ;;  %v365_v45 = vadd.f32 %v469_v29, %v350_v36  ;;  %v314_v46 = vadd.f32 %v602_v10, %v299_v37  ;;  %v489_v47 = vunpack.c.l.bf16 %v509_v34 }
  0x1a   : > { %v366_v48 = vadd.f32 %v469_v29, %v351_v40  ;;  %v367_v49 = vadd.f32 %v469_v29, %v352_v41  ;;  %v315_v50 = vadd.f32 %v602_v10, %v300_v42  ;;  %v505_v51 = vunpack.c.l.bf16 %v512_v39 }
  0x1b   : > { %v372_v52 = vmax.f32 %v364_v44, 0.0  ;;  %v373_v53 = vmax.f32 %v365_v45, 0.0  ;;  %v353_v54 = vadd.f32 %v345_v38, %v314_v46  ;;  %v301_v55 = vmul.f32 %v489_v47, %v588_v0 }
  0x1c   : > { %v374_v56 = vmax.f32 %v366_v48, 0.0  ;;  %v375_v57 = vmax.f32 %v367_v49, 0.0  ;;  %v354_v58 = vadd.f32 %v346_v43, %v315_v50  ;;  %v347_v59 = vmul.f32 %v505_v51, %v593_v1 }
  0x1d   : > { %380 = vst [vmem:[%s632_s17] sm:$0xff] %v372_v52  ;;  %381 = vst [vmem:[%s632_s17 + $0x8] sm:$0xff] %v373_v53  ;;  %v368_v60 = vadd.f32 %v469_v29, %v353_v54  ;;  %v316_v61 = vadd.f32 %v602_v10, %v301_v55  ;;  %v490_v62 = vunpack.c.h.bf16 %v509_v34  ;;  %v506_v63 = vunpack.c.h.bf16 %v512_v39 }
  0x1e   : > { %382 = vst [vmem:[%s632_s17 + $0x10] sm:$0xff] %v374_v56  ;;  %383 = vst [vmem:[%s632_s17 + $0x18] sm:$0xff] %v375_v57  ;;  %v369_v2 = vadd.f32 %v469_v29, %v354_v58 }
  0x1f   : > { %v376_v3 = vmax.f32 %v368_v60, 0.0  ;;  %v355_v4 = vadd.f32 %v347_v59, %v316_v61  ;;  %v302_v5 = vmul.f32 %v490_v62, %v588_v0  ;;  %v348_v6 = vmul.f32 %v506_v63, %v593_v1 }
  0x20   : > { %v377_v7 = vmax.f32 %v369_v2, 0.0 }
  0x21   : > { %384 = vst [vmem:[%s632_s17 + $0x20] sm:$0xff] %v376_v3  ;;  %v370_v8 = vadd.f32 %v469_v29, %v355_v4  ;;  %v317_v9 = vadd.f32 %v602_v10, %v302_v5 }
  0x22   : > { %385 = vst [vmem:[%s632_s17 + $0x28] sm:$0xff] %v377_v7 }
  0x23   : > { %v378_v11 = vmax.f32 %v370_v8, 0.0  ;;  %v356_v12 = vadd.f32 %v348_v6, %v317_v9 }
  0x25   : > { %386 = vst [vmem:[%s632_s17 + $0x30] sm:$0xff] %v378_v11  ;;  %v371_v13 = vadd.f32 %v469_v29, %v356_v12 }
  0x27   : > { %v379_v14 = vmax.f32 %v371_v13, 0.0 }
  0x29   : > { %387 = vst [vmem:[%s632_s17 + $0x38] sm:$0xff] %v379_v14 }
  0x2a PF: > { %s16_s21 = sadd.s32 1, %s527_s21  }
  0x2b   : > { %p13_p4 = scmp.ge.s32.totalorder %s16_s21, 4  }
  0x2d   :  { %15 = sbr.rel (!%p13_p4) target bundleno = 1 (0x1), region = 77 }

// kernel: residual_block_forward.4
= control target key start
LH: loop header
LB: loop body
LE: loop exit
PB: predicated region body
PF: predicated region fallthrough
CT: control target
= control target key end

     0   :  { %s3833_s27 = smov 0   ;;  %s4522_s0 = inlined_call_operand.vmem [shape: bf16[2,8,8,128], index: 0, kind: input, shape index: {}]   ;;  %s4523_s1 = inlined_call_operand.vmem [shape: f32[1,128], index: 1, kind: input, shape index: {}]   ;;  %s4524_s2 = inlined_call_operand.vmem [shape: f32[1,128], index: 2, kind: input, shape index: {}]   ;;  %s4525_s3 = inlined_call_operand.vmem [shape: bf16[9,128,128], index: 3, kind: input, shape index: {}]   ;;  %s4526_s4 = inlined_call_operand.vmem [shape: bf16[2,8,8,4], index: 4, kind: input, shape index: {}]   ;;  %s4527_s5 = inlined_call_operand.vmem [shape: bf16[4,128], index: 5, kind: input, shape index: {}]   ;;  %s4528_s6 = inlined_call_operand.vmem [shape: bf16[2,8,8,128], index: 6, kind: output, shape index: {0}]   ;;  %s4529_s7 = inlined_call_operand.vmem [shape: bf16[2,8,8,128], index: 7, kind: output, shape index: {1}]   ;;  %s4530_s8 = inlined_call_operand.vmem [shape: f32[2,4,128], index: 8, kind: output, shape index: {2}]  }
   0x1 LB: > { %s2907_s28 = sadd.s32 4294967295, %s3785_s27   ;;  %p2911_p0 = scmp.ge.s32.totalorder %s3785_s27, 1  ;;  %s3785_s27 = sphi %s3833_s27, %s19_s27  }
   0x2   : > { %p277_p1 = scmp.lt.s32.totalorder %s3785_s27, 3 }
   0x4   : > { %p278_p2 = pnand %p2911_p0, %p277_p1 }
   0x5   : > { %v3691_v0 = vld [vmem:[%s4525_s3 + $0x40] sm:$0xff] (!%p278_p2)   ;;  %v3693_v2 = vld [vmem:[%s4525_s3 + $0x48] sm:$0xff] (!%p278_p2)   ;;  %p3852_p3 = scmp.lt.s32.totalorder (!%p278_p2), %s2907_s28, 1  ;;  %v3787_v3 = vmov (!%p278_p2), 0   ;;  %v3695_v5 = vld [vmem:[%s4525_s3 + $0x50] sm:$0xff] (!%p278_p2)   ;;  %vm537_vm0 = vcmask (!%p278_p2), 1043456  }
   0x6   : > { %281 = sbr.rel (%p278_p2) target bundleno = 456 (0x1c8), region = 44  ;;  %v3692_v1 = vld [vmem:[%s4525_s3 + $0x100] sm:$0xff] (!%p278_p2)   ;;  %3391 = vmatprep.subr.bf16.mxu1 (!%p278_p2), %v3691_v0  ;;  %404 = vst [vmem:[#allocation2] sm:$0xf] (!%p278_p2), %v3787_v3  ;;  %405 = vst [vmem:[#allocation2 + $0x4] sm:$0x1] (!%p278_p2), %v3787_v3 }
   0x7   : > { %406 = vst [vmem:[#allocation2 + $0x8] sm:$0xf] (!%p278_p2), %v3787_v3  ;;  %407 = vst [vmem:[#allocation2 + $0xc] sm:$0x1] (!%p278_p2), %v3787_v3  ;;  %3487 = vmatprep.subr.bf16.mxu0 (!%p278_p2), %v3692_v1  ;;  %3392 = vmatpush3.bf16.msra.mxu1 (!%p278_p2), %v3691_v0  ;;  %v3694_v4 = vld [vmem:[%s4525_s3 + $0x108] sm:$0xff] (!%p278_p2)   ;;  %v3696_v6 = vld [vmem:[%s4525_s3 + $0x110] sm:$0xff] (!%p278_p2)  }
   0x8   : > { %408 = vst [vmem:[#allocation2 + $0x10] sm:$0xf] (!%p278_p2), %v3787_v3  ;;  %409 = vst [vmem:[#allocation2 + $0x14] sm:$0x1] (!%p278_p2), %v3787_v3  ;;  %3488 = vmatpush3.bf16.msra.mxu0 (!%p278_p2), %v3692_v1  ;;  %3393 = vmatprep.subr.bf16.mxu1 (!%p278_p2), %v3693_v2  ;;  %v3697_v7 = vld [vmem:[%s4525_s3 + $0x58] sm:$0xff] (!%p278_p2)   ;;  %v3699_v9 = vld [vmem:[%s4525_s3 + $0x60] sm:$0xff] (!%p278_p2)  }
   0x9   : > { %410 = vst [vmem:[#allocation2 + $0x18] sm:$0xf] (!%p278_p2), %v3787_v3  ;;  %411 = vst [vmem:[#allocation2 + $0x1c] sm:$0x1] (!%p278_p2), %v3787_v3  ;;  %3489 = vmatprep.subr.bf16.mxu0 (!%p278_p2), %v3694_v4  ;;  %v3698_v8 = vld [vmem:[%s4525_s3 + $0x118] sm:$0xff] (!%p278_p2)   ;;  %v3700_v10 = vld [vmem:[%s4525_s3 + $0x120] sm:$0xff] (!%p278_p2)  }
   0xa   : > { %412 = vst [vmem:[#allocation2 + $0x20] sm:$0xf] (!%p278_p2), %v3787_v3  ;;  %413 = vst [vmem:[#allocation2 + $0x24] sm:$0x1] (!%p278_p2), %v3787_v3  ;;  %v3701_v11 = vld [vmem:[%s4525_s3 + $0x68] sm:$0xff] (!%p278_p2)   ;;  %v3703_v20 = vld [vmem:[%s4525_s3 + $0x70] sm:$0xff] (!%p278_p2)  }
   0xb   : > { %414 = vst [vmem:[#allocation2 + $0x28] sm:$0xf] (!%p278_p2), %v3787_v3  ;;  %415 = vst [vmem:[#allocation2 + $0x2c] sm:$0x1] (!%p278_p2), %v3787_v3  ;;  %3394 = vmatpush3.bf16.msra.mxu1 (!%p278_p2), %v3693_v2  ;;  %v3899_v13 = vld [vmem:[%s4523_s1] ss:$0 sm:$0xff] (!%p278_p2) }
   0xc   : > { %416 = vst [vmem:[#allocation2 + $0x30] sm:$0xf] (!%p278_p2), %v3787_v3  ;;  %417 = vst [vmem:[#allocation2 + $0x34] sm:$0x1] (!%p278_p2), %v3787_v3  ;;  %3490 = vmatpush3.bf16.msra.mxu0 (!%p278_p2), %v3694_v4  ;;  %3395 = vmatprep.subr.bf16.mxu1 (!%p278_p2), %v3695_v5  ;;  %v3702_v14 = vld [vmem:[%s4525_s3 + $0x128] sm:$0xff] (!%p278_p2)   ;;  %v3704_v23 = vld [vmem:[%s4525_s3 + $0x130] sm:$0xff] (!%p278_p2)  }
   0xd   : > { %418 = vst [vmem:[#allocation2 + $0x38] sm:$0xf] %v3787_v3  ;;  %419 = vst [vmem:[#allocation2 + $0x3c] sm:$0x1] %v3787_v3  ;;  %s4541_s28 = smov (!%p3852_p3, %s2907_s28), 1  ;;  %3491 = vmatprep.subr.bf16.mxu0 %v3696_v6  ;;  %v3705_v28 = vld [vmem:[%s4525_s3 + $0x78] sm:$0xff]  }
   0xe   : > { %420 = vst [vmem:[#allocation2 + $0x40] sm:$0xf] %v3787_v3  ;;  %421 = vst [vmem:[#allocation2 + $0x44] sm:$0x1] %v3787_v3  ;;  %s3878_s24 = sshll.u32 %s4541_s28, 5  ;;  %vm543_vm1 = vcmask 1040384  }
   0xf   : > { %422 = vst [vmem:[#allocation2 + $0x48] sm:$0xf] %v3787_v3  ;;  %423 = vst [vmem:[#allocation2 + $0x4c] sm:$0x1] %v3787_v3  ;;  %3396 = vmatpush3.bf16.msra.mxu1 %v3695_v5  ;;  %s3890_s11 = scalar_lea.vmem %s4522_s0, %s3878_s24  ;;  %v3907_v17 = vld [vmem:[%s4524_s2] ss:$0 sm:$0xff]  ;;  %s4330_s20 = scalar_lea.vmem %s4526_s4, %s3878_s24 }
  0x10   : > { %3492 = vmatpush3.bf16.msra.mxu0 %v3696_v6  ;;  %3397 = vmatprep.subr.bf16.mxu1 %v3697_v7  ;;  %v3214_v12 = vld [vmem:[%s3890_s11] sm:$0xff]   ;;  %v3269_v27 = vld [vmem:[%s3890_s11 + $0x8] sm:$0xff]   ;;  %vm538_vm2 = vsmask.f32 7938  ;;  %vm544_vm3 = vsmask.f32 256  ;;  %s344_s15 = scalar_lea.vmem %s4529_s7, %s3878_s24  ;;  %s4502_s18 = scalar_lea.vmem %s4528_s6, %s3878_s24 }
  0x11   : > { %3493 = vmatprep.subr.bf16.mxu0 %v3698_v8  ;;  %v3215_v15 = vunpack.c.l.bf16 %v3214_v12  ;;  %v3216_v16 = vunpack.c.h.bf16 %v3214_v12  ;;  %v3909_v18 = vld [vmem:[#allocation2] sm:$0xf]  ;;  %v3219_v30 = vunpack.c.l.bf16 %v3269_v27  ;;  %v3220_v31 = vunpack.c.h.bf16 %v3269_v27  ;;  %v3706_v34 = vld [vmem:[%s4525_s3 + $0x138] sm:$0xff]   ;;  %v3934_v39 = vld [vmem:[#allocation2 + $0x4] sm:$0x1]  ;;  %s2920_s24 = sshll.u32 %s4541_s28, 2 }
  0x12   : > { %v627_v21 = vshrl.u32 %v3909_v18, 16  ;;  %v630_v25 = vshll.u32 %v3909_v18, 16  ;;  %v3939_v40 = vld [vmem:[%s4525_s3] sm:$0xff]   ;;  %v540_v46 = vld [vmem:[#allocation2 + $0x8] sm:$0xf]  ;;  %vm3950_vm6 = vmand %vm537_vm0, %vm538_vm2  ;;  %v636_v61 = vshll.u32 %v3934_v39, 16  ;;  %s348_s22 = scalar_lea.vmem %s4530_s8, %s2920_s24 }
  0x13   : > { %3398 = vmatpush3.bf16.msra.mxu1 %v3697_v7  ;;  %v373_v19 = vmul.f32 %v3215_v15, %v3899_v13  ;;  %v374_v22 = vmul.f32 %v3216_v16, %v3899_v13  ;;  %v375_v37 = vmul.f32 %v3219_v30, %v3899_v13  ;;  %v376_v38 = vmul.f32 %v3220_v31, %v3899_v13  ;;  %v3944_v44 = vld [vmem:[%s4525_s3 + $0x140] sm:$0xff]   ;;  %v546_v47 = vld [vmem:[#allocation2 + $0xc] sm:$0x1]  ;;  %v549_v53 = vld [vmem:[#allocation2 + $0x10] sm:$0xf] }
  0x14   : > { %3494 = vmatpush3.bf16.msra.mxu0 %v3698_v8  ;;  %3399 = vmatprep.subr.bf16.mxu1 %v3699_v9  ;;  %v3927_v32 = vrot.slane %v627_v21, 4  ;;  %v632_v36 = vrot.slane %v630_v25, 5  ;;  %vm623_vm4 = vsmask.f32 3328  ;;  %vm624_vm5 = vsmask.f32 7440  ;;  %vm3956_vm7 = vmand %vm543_vm1, %vm544_vm3 }
  0x15   : > { %3495 = vmatprep.subr.bf16.mxu0 %v3700_v10  ;;  %v388_v24 = vadd.f32 %v3907_v17, %v373_v19  ;;  %v389_v26 = vadd.f32 %v3907_v17, %v374_v22  ;;  %v390_v45 = vadd.f32 %v3907_v17, %v375_v37  ;;  %v391_v50 = vadd.f32 %v3907_v17, %v376_v38  ;;  %v552_v54 = vld [vmem:[#allocation2 + $0x14] sm:$0x1]  ;;  %v561_v16 = vld [vmem:[#allocation2 + $0x20] sm:$0xf]  ;;  %v564_v19 = vld [vmem:[#allocation2 + $0x24] sm:$0x1] }
  0x16   : > { %v633_v63 = vor.u32 %v632_v36, %v3927_v32  ;;  %vm3979_vm8 = vmor %vm623_vm4, %vm624_vm5  ;;  %v1050_v32 = vrot.slane %v3934_v39, 5  ;;  %vm1045_vm9 = vcmask 1042432   ;;  %vm1046_vm10 = vcmask 1046532   ;;  %v3731_v39 = vld [vmem:[%s4525_s3 + $0x98] sm:$0xff]  }
  0x17   : > { %3400 = vmatpush3.bf16.msra.mxu1 %v3699_v9  ;;  %v396_v29 = vmax.f32 %v388_v24, 0.0  ;;  %v397_v33 = vmax.f32 %v389_v26, 0.0  ;;  %v398_v55 = vmax.f32 %v390_v45, 0.0  ;;  %v399_v58 = vmax.f32 %v391_v50, 0.0  ;;  %v555_v9 = vld [vmem:[#allocation2 + $0x18] sm:$0xf]  ;;  %vm4198_vm11 = vmor %vm1045_vm9, %vm1046_vm10 }
  0x18   : > { %3496 = vmatpush3.bf16.msra.mxu0 %v3700_v10  ;;  %3401 = vmatprep.subr.bf16.mxu1 %v3701_v11  ;;  %v558_v10 = vld [vmem:[#allocation2 + $0x1c] sm:$0x1]  ;;  %v3975_v24 = vrot.slane %v636_v61, 5  ;;  %vm2651_vm12 = vcmask 1041408   ;;  %vm2638_vm13 = vcmask 31744  }
  0x19   : > { %3497 = vmatprep.subr.bf16.mxu0 %v3702_v14  ;;  %v3205_v35 = vpack.c.bf16 %v396_v29, %v396_v29  ;;  %v3206_v41 = vpack.c.bf16 %v397_v33, %v397_v33  ;;  %v3207_v62 = vpack.c.bf16 %v398_v55, %v398_v55  ;;  %v3208_v2 = vpack.c.bf16 %v399_v58, %v399_v58  ;;  %v3770_v27 = vld [vmem:[%s4525_s3 + $0x218] sm:$0xff]  }
  0x1b   : > { %3402 = vmatpush3.bf16.msra.mxu1 %v3701_v11  ;;  %v457_v42 = vshrl.u32 %v3205_v35, 16  ;;  %v460_v43 = vshll.u32 %v3205_v35, 16  ;;  %v465_v48 = vshrl.u32 %v3206_v41, 16  ;;  %v468_v49 = vshll.u32 %v3206_v41, 16  ;;  %v3993_v35 = vld [vmem:[%s3890_s11 + $0x18] sm:$0xff]  }
  0x1c   : > { %3498 = vmatpush3.bf16.msra.mxu0 %v3702_v14  ;;  %3403 = vmatprep.subr.bf16.mxu1 %v3703_v20  ;;  %v473_v5 = vshrl.u32 %v3207_v62, 16  ;;  %v476_v6 = vshll.u32 %v3207_v62, 16  ;;  %v481_v11 = vshrl.u32 %v3208_v2, 16  ;;  %v484_v12 = vshll.u32 %v3208_v2, 16 }
  0x1d   : > { %3499 = vmatprep.subr.bf16.mxu0 %v3704_v23  ;;  %v459_v51 = vrot.slane %v457_v42, 7  ;;  %v467_v57 = vrot.slane %v465_v48, 7  ;;  %v3227_v58 = vunpack.c.l.bf16 %v3993_v35 }
  0x1e   : > { %v475_v14 = vrot.slane %v473_v5, 7  ;;  %v483_v15 = vrot.slane %v481_v11, 7 }
  0x1f   : > { %3404 = vmatpush3.bf16.msra.mxu1 %v3703_v20  ;;  %v462_v59 = vor.u32 %v460_v43, %v459_v51  ;;  %v463_v60 = vrot.slane %v459_v51, 4  ;;  %v470_v0 = vor.u32 %v468_v49, %v467_v57  ;;  %v471_v1 = vrot.slane %v467_v57, 4  ;;  %v3270_v20 = vld [vmem:[%s3890_s11 + $0x10] sm:$0xff]  }
  0x20   : > { %3500 = vmatpush3.bf16.msra.mxu0 %v3704_v23  ;;  %3405 = vmatprep.subr.bf16.mxu1 %v3705_v28  ;;  %v478_v21 = vor.u32 %v476_v6, %v475_v14  ;;  %v479_v22 = vrot.slane %v475_v14, 4  ;;  %v3973_v23 = vrot.slane %v633_v63, 4  ;;  %v486_v25 = vor.u32 %v484_v12, %v483_v15 }
  0x21   : > { %3501 = vmatprep.subr.bf16.mxu0 %v3706_v34  ;;  %v541_v3 = vsel %vm3950_vm6, %v462_v59, %v540_v46  ;;  %v547_v4 = vsel %vm3956_vm7, %v463_v60, %v546_v47  ;;  %v550_v7 = vsel %vm3950_vm6, %v470_v0, %v549_v53  ;;  %v553_v8 = vsel %vm3956_vm7, %v471_v1, %v552_v54 }
  0x22   : > { %542 = vst [vmem:[#allocation2 + $0x8] sm:$0xf] %v541_v3  ;;  %548 = vst [vmem:[#allocation2 + $0xc] sm:$0x1] %v547_v4  ;;  %v487_v26 = vrot.slane %v483_v15, 4  ;;  %v559_v29 = vsel %vm3956_vm7, %v479_v22, %v558_v10  ;;  %v3223_v30 = vunpack.c.l.bf16 %v3270_v20  ;;  %v3224_v31 = vunpack.c.h.bf16 %v3270_v20 }
  0x23   : > { %3406 = vmatpush3.bf16.msra.mxu1 %v3705_v28  ;;  %551 = vst [vmem:[#allocation2 + $0x10] sm:$0xf] %v550_v7  ;;  %554 = vst [vmem:[#allocation2 + $0x14] sm:$0x1] %v553_v8  ;;  %v556_v28 = vsel %vm3950_vm6, %v478_v21, %v555_v9  ;;  %v562_v33 = vsel %vm3950_vm6, %v486_v25, %v561_v16  ;;  %v639_v41 = vsel %vm3979_vm8, %v3973_v23, %v3975_v24 }
  0x24   : > { %3502 = vmatpush3.bf16.msra.mxu0 %v3706_v34  ;;  %3415 = vmatprep.subr.bf16.mxu1 %v3939_v40  ;;  %557 = vst [vmem:[#allocation2 + $0x18] sm:$0xf] %v556_v28  ;;  %560 = vst [vmem:[#allocation2 + $0x1c] sm:$0x1] %v559_v29  ;;  %v565_v34 = vsel %vm3956_vm7, %v487_v26, %v564_v19  ;;  %v377_v51 = vmul.f32 %v3223_v30, %v3899_v13  ;;  %v3228_v4 = vunpack.c.h.bf16 %v3993_v35 }
  0x25   : > { %3511 = vmatprep.subr.bf16.mxu0 %v3944_v44  ;;  %563 = vst [vmem:[#allocation2 + $0x20] sm:$0xf] %v562_v33  ;;  %566 = vst [vmem:[#allocation2 + $0x24] sm:$0x1] %v565_v34  ;;  %v378_v53 = vmul.f32 %v3224_v31, %v3899_v13 }
  0x29   : > { %v3995_v36 = vld [vmem:[#allocation2 + $0x8] sm:$0xf]  ;;  %v3997_v37 = vld [vmem:[#allocation2 + $0xc] sm:$0x1] }
  0x2a   : > { %v1404_v38 = vld [vmem:[#allocation2 + $0x8] sm:$0xf]  ;;  %v641_v42 = vshrl.u32 %v3995_v36, 16  ;;  %v644_v43 = vshll.u32 %v3995_v36, 16  ;;  %v650_v45 = vshll.u32 %v3997_v37, 16 }
  0x2b   : > { %v4006_v46 = vld [vmem:[#allocation2 + $0xc] sm:$0x1]  ;;  %v1406_v47 = vld [vmem:[#allocation2 + $0x10] sm:$0xf]  ;;  %v4008_v48 = vld [vmem:[#allocation2 + $0x14] sm:$0x1] }
  0x2c   : > { %v1421_v49 = vshrl.u32 %v1404_v38, 16  ;;  %v1424_v50 = vshll.u32 %v1404_v38, 16  ;;  %v643_v54 = vrot.slane %v641_v42, 4  ;;  %v646_v55 = vrot.slane %v644_v43, 5  ;;  %v4014_v63 = vld [vmem:[#allocation2 + $0x10] sm:$0xf] }
  0x2d   : > { %v1430_v57 = vshll.u32 %v4006_v46, 16  ;;  %v1435_v61 = vshrl.u32 %v1406_v47, 16  ;;  %v1438_v62 = vshll.u32 %v1406_v47, 16  ;;  %v652_v1 = vrot.slane %v650_v45, 5  ;;  %v4017_v3 = vld [vmem:[#allocation2 + $0x14] sm:$0x1] }
  0x2e   : > { %v1423_v59 = vrot.slane %v1421_v49, 4  ;;  %v1426_v60 = vrot.slane %v1424_v50, 5  ;;  %v647_v0 = vor.u32 %v646_v55, %v643_v54  ;;  %v1444_v2 = vshll.u32 %v4008_v48, 16  ;;  %v4020_v9 = vld [vmem:[#allocation2 + $0x18] sm:$0xf] }
  0x2f   : > { %v1432_v6 = vrot.slane %v1430_v57, 5  ;;  %v1437_v7 = vrot.slane %v1435_v61, 4  ;;  %v1440_v8 = vrot.slane %v1438_v62, 5  ;;  %v655_v12 = vshrl.u32 %v4014_v63, 16  ;;  %v4024_v19 = vld [vmem:[#allocation2 + $0x1c] sm:$0x1] }
  0x30   : > { %v1427_v5 = vor.u32 %v1426_v60, %v1423_v59  ;;  %v648_v10 = vrot.slane %v647_v0, 4  ;;  %v1446_v11 = vrot.slane %v1444_v2, 5  ;;  %v658_v14 = vshll.u32 %v4014_v63, 16  ;;  %v1408_v26 = vld [vmem:[#allocation2 + $0x18] sm:$0xf] }
  0x31   : > { %v1441_v16 = vor.u32 %v1440_v8, %v1437_v7  ;;  %v664_v20 = vshll.u32 %v4017_v3, 16  ;;  %v669_v21 = vshrl.u32 %v4020_v9, 16  ;;  %v657_v23 = vrot.slane %v655_v12, 4  ;;  %v4033_v33 = vld [vmem:[#allocation2 + $0x1c] sm:$0x1] }
  0x32   : > { %v1428_v15 = vrot.slane %v1427_v5, 4  ;;  %v653_v22 = vsel %vm3979_vm8, %v648_v10, %v652_v1  ;;  %v660_v24 = vrot.slane %v658_v14, 5  ;;  %v672_v25 = vshll.u32 %v4020_v9, 16  ;;  %v1410_v43 = vld [vmem:[#allocation2 + $0x20] sm:$0xf] }
  0x33   : > { %v2947_v28 = vcombine.low %v639_v41, %v653_v22  ;;  %v1442_v30 = vrot.slane %v1441_v16, 4  ;;  %v666_v31 = vrot.slane %v664_v20, 5  ;;  %v671_v35 = vrot.slane %v669_v21, 4  ;;  %v4038_v47 = vld [vmem:[#allocation2 + $0x24] sm:$0x1]  ;;  %v3709_v21 = vld [vmem:[%s4525_s3 + $0x8] sm:$0xff]  }
  0x34   : > { %v1433_v29 = vsel %vm3979_vm8, %v1428_v15, %v1432_v6  ;;  %v661_v34 = vor.u32 %v660_v24, %v657_v23  ;;  %v674_v38 = vrot.slane %v672_v25, 5  ;;  %v678_v42 = vshll.u32 %v4024_v19, 16  ;;  %v4055_v23 = vld [vmem:[#allocation2 + $0x20] sm:$0xf] }
  0x35   : > { %3407 = vmatprep.mubr.bf16.mxu1 %v2947_v28  ;;  %v1447_v45 = vsel %vm3979_vm8, %v1442_v30, %v1446_v11  ;;  %v1449_v41 = vshrl.u32 %v1408_v26, 16  ;;  %v392_v49 = vadd.f32 %v3907_v17, %v377_v51  ;;  %v393_v50 = vadd.f32 %v3907_v17, %v378_v53 }
  0x36   : > { %v3051_v54 = vcombine.low %v1433_v29, %v1447_v45  ;;  %v662_v55 = vrot.slane %v661_v34, 4  ;;  %v675_v57 = vor.u32 %v674_v38, %v671_v35  ;;  %v680_v59 = vrot.slane %v678_v42, 5 }
  0x37   : > { %v1451_v60 = vrot.slane %v1449_v41, 4  ;;  %v1452_v61 = vshll.u32 %v1408_v26, 16  ;;  %v1458_v62 = vshll.u32 %v4033_v33, 16  ;;  %v1463_v0 = vshrl.u32 %v1410_v43, 16 }
  0x38   : > { %3503 = vmatprep.mubr.bf16.mxu0 %v3051_v54  ;;  %v667_v1 = vsel %vm3979_vm8, %v662_v55, %v666_v31  ;;  %v676_v2 = vrot.slane %v675_v57, 4  ;;  %v1466_v5 = vshll.u32 %v1410_v43, 16  ;;  %v1472_v6 = vshll.u32 %v4038_v47, 16  ;;  %v4061_v31 = vld [vmem:[#allocation2 + $0x24] sm:$0x1]  ;;  %v3711_v43 = vld [vmem:[%s4525_s3 + $0x10] sm:$0xff]  }
  0x39   : > { %v1054_v51 = vrot.slane %v3997_v37, 5  ;;  %v1454_v53 = vrot.slane %v1452_v61, 5  ;;  %v1465_v7 = vrot.slane %v1463_v0, 4  ;;  %v379_v8 = vmul.f32 %v3227_v58, %v3899_v13  ;;  %v570_v54 = vld [vmem:[#allocation2 + $0x2c] sm:$0x1] }
  0x3a   : > { %v1712_v10 = vrot.slane %v4006_v46, 5  ;;  %v681_v11 = vsel %vm3979_vm8, %v676_v2, %v680_v59  ;;  %v1468_v12 = vrot.slane %v1466_v5, 5  ;;  %v380_v14 = vmul.f32 %v3228_v4, %v3899_v13  ;;  %v576_v0 = vld [vmem:[#allocation2 + $0x34] sm:$0x1] }
  0x3b   : > { %v2948_v15 = vcombine.low %v667_v1, %v681_v11  ;;  %v1455_v16 = vor.u32 %v1454_v53, %v1451_v60  ;;  %v1460_v20 = vrot.slane %v1458_v62, 5  ;;  %v400_v22 = vmax.f32 %v392_v49, 0.0  ;;  %v3710_v60 = vld [vmem:[%s4525_s3 + $0x148] sm:$0xff]   ;;  %v573_v62 = vld [vmem:[#allocation2 + $0x30] sm:$0xf]  ;;  %v3713_v11 = vld [vmem:[%s4525_s3 + $0x18] sm:$0xff]  }
  0x3c   : > { %v1716_v58 = vrot.slane %v4008_v48, 5  ;;  %v1469_v24 = vor.u32 %v1468_v12, %v1465_v7  ;;  %v1474_v25 = vrot.slane %v1472_v6, 5  ;;  %v401_v26 = vmax.f32 %v393_v50, 0.0  ;;  %v567_v50 = vld [vmem:[#allocation2 + $0x28] sm:$0xf] }
  0x3d   : > { %3408 = vmatmul.mubr.bf16.vlgmr.msra.gmra.mrb[0].mxu1 %v2948_v15  ;;  %v1058_v28 = vrot.slane %v4017_v3, 5  ;;  %v1456_v29 = vrot.slane %v1455_v16, 4  ;;  %v3209_v13 = vpack.c.bf16 %v400_v22, %v400_v22  ;;  %v394_v4 = vadd.f32 %v3907_v17, %v379_v8  ;;  %v3712_v8 = vld [vmem:[%s4525_s3 + $0x150] sm:$0xff]  }
  0x3e   : > { %3416 = vmatpush3.bf16.msra.mxu1 %v3939_v40  ;;  %v1470_v30 = vrot.slane %v1469_v24, 4  ;;  %v683_v34 = vshrl.u32 %v4055_v23, 16  ;;  %v686_v35 = vshll.u32 %v4055_v23, 16  ;;  %v3210_v38 = vpack.c.bf16 %v401_v26, %v401_v26 }
  0x3f   : > { %v1461_v42 = vsel %vm3979_vm8, %v1456_v29, %v1460_v20  ;;  %3417 = vmatprep.subr.bf16.mxu1 %v3709_v21  ;;  %v489_v45 = vshrl.u32 %v3209_v13, 16  ;;  %v492_v41 = vshll.u32 %v3209_v13, 16  ;;  %v402_v49 = vmax.f32 %v394_v4, 0.0 }
  0x40   : > { %v1475_v40 = vsel %vm3979_vm8, %v1470_v30, %v1474_v25  ;;  %v497_v55 = vshrl.u32 %v3210_v38, 16  ;;  %v500_v57 = vshll.u32 %v3210_v38, 16  ;;  %v395_v2 = vadd.f32 %v3907_v17, %v380_v14  ;;  %v3715_v25 = vld [vmem:[%s4525_s3 + $0x20] sm:$0xff]  }
  0x41   : > { %v3052_v59 = vcombine.low %v1461_v42, %v1475_v40  ;;  %v491_v61 = vrot.slane %v489_v45, 7  ;;  %v3211_v1 = vpack.c.bf16 %v402_v49, %v402_v49  ;;  %v685_v5 = vrot.slane %v683_v34, 4  ;;  %v582_v34 = vld [vmem:[#allocation2 + $0x3c] sm:$0x1] }
  0x42   : > { %3418 = vmatpush3.bf16.msra.mxu1 %v3709_v21  ;;  %v688_v6 = vrot.slane %v686_v35, 5  ;;  %v692_v53 = vshll.u32 %v4061_v31, 16  ;;  %v499_v7 = vrot.slane %v497_v55, 7  ;;  %v579_v21 = vld [vmem:[#allocation2 + $0x38] sm:$0xf]  ;;  %v403_v22 = vmax.f32 %v395_v2, 0.0 }
  0x43   : > { %3504 = vmatmul.mubr.bf16.vlgmr.msra.gmra.mrb[0].mxu0 %v3052_v59  ;;  %3419 = vmatprep.subr.bf16.mxu1 %v3711_v43  ;;  %v494_v12 = vor.u32 %v492_v41, %v491_v61  ;;  %v495_v15 = vrot.slane %v491_v61, 4  ;;  %v505_v16 = vshrl.u32 %v3211_v1, 16  ;;  %v508_v17 = vshll.u32 %v3211_v1, 16  ;;  %v3714_v42 = vld [vmem:[%s4525_s3 + $0x158] sm:$0xff]   ;;  %v4100_v41 = vld [vmem:[#allocation2 + $0x8] sm:$0xe] }
  0x44   : > { %3512 = vmatpush3.bf16.msra.mxu0 %v3944_v44  ;;  %v502_v14 = vor.u32 %v500_v57, %v499_v7  ;;  %v503_v20 = vrot.slane %v499_v7, 4  ;;  %v1062_v24 = vrot.slane %v4024_v19, 5  ;;  %v689_v44 = vor.u32 %v688_v6, %v685_v5  ;;  %v3717_v55 = vld [vmem:[%s4525_s3 + $0x28] sm:$0xff]   ;;  %v3716_v1 = vld [vmem:[%s4525_s3 + $0x160] sm:$0xff]  }
  0x45   : > { %3513 = vmatprep.subr.bf16.mxu0 %v3710_v60  ;;  %v568_v26 = vsel %vm3950_vm6, %v494_v12, %v567_v50  ;;  %v571_v29 = vsel %vm3956_vm7, %v495_v15, %v570_v54  ;;  %v507_v13 = vrot.slane %v505_v16, 7  ;;  %v3212_v35 = vpack.c.bf16 %v403_v22, %v403_v22 }
  0x46   : > { %3420 = vmatpush3.bf16.msra.mxu1 %v3711_v43  ;;  %569 = vst [vmem:[#allocation2 + $0x28] sm:$0xf] %v568_v26  ;;  %572 = vst [vmem:[#allocation2 + $0x2c] sm:$0x1] %v571_v29  ;;  %v574_v4 = vsel %vm3950_vm6, %v502_v14, %v573_v62  ;;  %v577_v30 = vsel %vm3956_vm7, %v503_v20, %v576_v0  ;;  %v1720_v38 = vrot.slane %v4033_v33, 5  ;;  %v1724_v49 = vrot.slane %v4038_v47, 5 }
  0x47   : > { %3421 = vmatprep.subr.bf16.mxu1 %v3713_v11  ;;  %575 = vst [vmem:[#allocation2 + $0x30] sm:$0xf] %v574_v4  ;;  %578 = vst [vmem:[#allocation2 + $0x34] sm:$0x1] %v577_v30  ;;  %v510_v43 = vor.u32 %v508_v17, %v507_v13  ;;  %v511_v45 = vrot.slane %v507_v13, 4  ;;  %v4103_v40 = vrot.slane %v692_v53, 5 }
  0x48   : > { %3514 = vmatpush3.bf16.msra.mxu0 %v3710_v60  ;;  %v513_v50 = vshrl.u32 %v3212_v35, 16  ;;  %v516_v54 = vshll.u32 %v3212_v35, 16  ;;  %v4112_v61 = vrot.slane %v689_v44, 4  ;;  %v585_v62 = vld [vmem:[#allocation2 + $0x40] sm:$0xf]  ;;  %v3063_v6 = vrot.slane %v4100_v41, 9 }
  0x49   : > { %3515 = vmatprep.subr.bf16.mxu0 %v3712_v8  ;;  %v580_v57 = vsel %vm3950_vm6, %v510_v43, %v579_v21  ;;  %v583_v59 = vsel %vm3956_vm7, %v511_v45, %v582_v34  ;;  %v588_v0 = vld [vmem:[#allocation2 + $0x44] sm:$0x1]  ;;  %v3718_v35 = vld [vmem:[%s4525_s3 + $0x168] sm:$0xff]   ;;  %v1023_v41 = vld [vmem:[#allocation2 + $0x10] sm:$0xe] }
  0x4a   : > { %3422 = vmatpush3.bf16.msra.mxu1 %v3713_v11  ;;  %581 = vst [vmem:[#allocation2 + $0x38] sm:$0xf] %v580_v57  ;;  %584 = vst [vmem:[#allocation2 + $0x3c] sm:$0x1] %v583_v59  ;;  %v515_v60 = vrot.slane %v513_v50, 7  ;;  %v3719_v11 = vld [vmem:[%s4525_s3 + $0x30] sm:$0xff]   ;;  %v695_v56 = vsel %vm3979_vm8, %v4112_v61, %v4103_v40 }
  0x4b   : > { %3423 = vmatprep.subr.bf16.mxu1 %v3715_v25  ;;  %v3721_v40 = vld [vmem:[%s4525_s3 + $0x38] sm:$0xff]   ;;  %v3729_v33 = vld [vmem:[%s4525_s3 + $0x90] sm:$0xff]  }
  0x4c   : > { %3516 = vmatpush3.bf16.msra.mxu0 %v3712_v8  ;;  %v518_v2 = vor.u32 %v516_v54, %v515_v60  ;;  %v519_v5 = vrot.slane %v515_v60, 4 }
  0x4d   : > { %3517 = vmatprep.subr.bf16.mxu0 %v3714_v42  ;;  %v4118_v53 = vld [vmem:[#allocation2 + $0x28] sm:$0xf]  ;;  %v4120_v7 = vld [vmem:[#allocation2 + $0x2c] sm:$0x1] }
  0x4e   : > { %v1412_v12 = vld [vmem:[#allocation2 + $0x28] sm:$0xf]  ;;  %3424 = vmatpush3.bf16.msra.mxu1 %v3715_v25  ;;  %v697_v15 = vshrl.u32 %v4118_v53, 16  ;;  %v700_v16 = vshll.u32 %v4118_v53, 16  ;;  %v706_v8 = vshll.u32 %v4120_v7, 16  ;;  %v586_v29 = vsel %vm3950_vm6, %v518_v2, %v585_v62 }
  0x4f   : > { %v4128_v17 = vld [vmem:[#allocation2 + $0x2c] sm:$0x1]  ;;  %v1477_v14 = vshrl.u32 %v1412_v12, 16  ;;  %3425 = vmatprep.subr.bf16.mxu1 %v3717_v55  ;;  %v1414_v20 = vld [vmem:[#allocation2 + $0x30] sm:$0xf]  ;;  %v1480_v22 = vshll.u32 %v1412_v12, 16  ;;  %v589_v25 = vsel %vm3956_vm7, %v519_v5, %v588_v0 }
  0x50   : > { %v4130_v21 = vld [vmem:[#allocation2 + $0x34] sm:$0x1]  ;;  %v1486_v26 = vshll.u32 %v4128_v17, 16  ;;  %3518 = vmatpush3.bf16.msra.mxu0 %v3714_v42  ;;  %v699_v13 = vrot.slane %v697_v15, 4  ;;  %v702_v44 = vrot.slane %v700_v16, 5  ;;  %v708_v4 = vrot.slane %v706_v8, 5 }
  0x51   : > { %v1479_v30 = vrot.slane %v1477_v14, 4  ;;  %v4137_v34 = vld [vmem:[#allocation2 + $0x30] sm:$0xf]  ;;  %587 = vst [vmem:[#allocation2 + $0x40] sm:$0xf] %v586_v29  ;;  %3519 = vmatprep.subr.bf16.mxu0 %v3716_v1  ;;  %v1482_v43 = vrot.slane %v1480_v22, 5 }
  0x52   : > { %590 = vst [vmem:[#allocation2 + $0x44] sm:$0x1] %v589_v25  ;;  %v1488_v52 = vrot.slane %v1486_v26, 5  ;;  %v1491_v45 = vshrl.u32 %v1414_v20, 16  ;;  %v1494_v50 = vshll.u32 %v1414_v20, 16  ;;  %3426 = vmatpush3.bf16.msra.mxu1 %v3717_v55  ;;  %v703_v42 = vor.u32 %v702_v44, %v699_v13  ;;  %v3720_v20 = vld [vmem:[%s4525_s3 + $0x170] sm:$0xff]  }
  0x53   : > { %v1500_v54 = vshll.u32 %v4130_v21, 16  ;;  %v4147_v57 = vld [vmem:[#allocation2 + $0x38] sm:$0xf]  ;;  %v4149_v59 = vld [vmem:[#allocation2 + $0x34] sm:$0x1]  ;;  %v711_v60 = vshrl.u32 %v4137_v34, 16  ;;  %3427 = vmatprep.subr.bf16.mxu1 %v3719_v11  ;;  %v1483_v62 = vor.u32 %v1482_v43, %v1479_v30 }
  0x54   : > { %v1493_v0 = vrot.slane %v1491_v45, 4  ;;  %v1496_v55 = vrot.slane %v1494_v50, 5  ;;  %v4152_v2 = vld [vmem:[#allocation2 + $0x3c] sm:$0x1]  ;;  %v714_v5 = vshll.u32 %v4137_v34, 16  ;;  %3520 = vmatpush3.bf16.msra.mxu0 %v3716_v1  ;;  %v704_v61 = vrot.slane %v703_v42, 4 }
  0x55   : > { %v1502_v12 = vrot.slane %v1500_v54, 5  ;;  %v713_v15 = vrot.slane %v711_v60, 4  ;;  %v720_v16 = vshll.u32 %v4149_v59, 16  ;;  %3521 = vmatprep.subr.bf16.mxu0 %v3718_v35  ;;  %v1484_v8 = vrot.slane %v1483_v62, 4  ;;  %v1416_v29 = vld [vmem:[#allocation2 + $0x38] sm:$0xf] }
  0x56   : > { %v1497_v14 = vor.u32 %v1496_v55, %v1493_v0  ;;  %v716_v22 = vrot.slane %v714_v5, 5  ;;  %v725_v26 = vshrl.u32 %v4147_v57, 16  ;;  %v709_v25 = vsel %vm3979_vm8, %v704_v61, %v708_v4  ;;  %3428 = vmatpush3.bf16.msra.mxu1 %v3719_v11  ;;  %v4167_v30 = vld [vmem:[#allocation2 + $0x3c] sm:$0x1]  ;;  %v4174_v4 = vld [vmem:[%s4525_s3 + $0x80] sm:$0xff]  }
  0x57   : > { %v722_v1 = vrot.slane %v720_v16, 5  ;;  %v728_v13 = vshll.u32 %v4147_v57, 16  ;;  %v734_v44 = vshll.u32 %v4152_v2, 16  ;;  %v2949_v43 = vcombine.low %v695_v56, %v709_v25  ;;  %3429 = vmatprep.subr.bf16.mxu1 %v3721_v40  ;;  %v1687_v60 = vld [vmem:[#allocation2 + $0x10] sm:$0xe] }
  0x58   : > { %v1489_v45 = vsel %vm3979_vm8, %v1484_v8, %v1488_v52  ;;  %v1498_v50 = vrot.slane %v1497_v14, 4  ;;  %v717_v42 = vor.u32 %v716_v22, %v713_v15  ;;  %v1418_v54 = vld [vmem:[#allocation2 + $0x40] sm:$0xf]  ;;  %3522 = vmatpush3.bf16.msra.mxu0 %v3718_v35  ;;  %v727_v62 = vrot.slane %v725_v26, 4  ;;  %v4176_v5 = vld [vmem:[#allocation2 + $0x18] sm:$0xe] }
  0x59   : > { %v730_v0 = vrot.slane %v728_v13, 5  ;;  %v736_v11 = vrot.slane %v734_v44, 5  ;;  %v1505_v55 = vshrl.u32 %v1416_v29, 16  ;;  %3411 = vmatprep.mubr.bf16.mxu1 %v2949_v43  ;;  %3523 = vmatprep.subr.bf16.mxu0 %v3720_v20  ;;  %v4180_v61 = vld [vmem:[#allocation2 + $0x44] sm:$0x1]  ;;  %v1508_v15 = vshll.u32 %v1416_v29, 16 }
  0x5a   : > { %v1503_v52 = vsel %vm3979_vm8, %v1498_v50, %v1502_v12  ;;  %v718_v56 = vrot.slane %v717_v42, 4  ;;  %v1514_v16 = vshll.u32 %v4167_v30, 16  ;;  %v3722_v35 = vld [vmem:[%s4525_s3 + $0x178] sm:$0xff]   ;;  %v1519_v26 = vshrl.u32 %v1418_v54, 16  ;;  %3430 = vmatpush3.bf16.msra.mxu1 %v3721_v40  ;;  %v1689_v44 = vld [vmem:[#allocation2 + $0x20] sm:$0xe] }
  0x5b   : > { %v3053_v8 = vcombine.low %v1489_v45, %v1503_v52  ;;  %v731_v14 = vor.u32 %v730_v0, %v727_v62  ;;  %v1507_v22 = vrot.slane %v1505_v55, 4  ;;  %v1510_v25 = vrot.slane %v1508_v15, 5  ;;  %3439 = vmatprep.subr.bf16.mxu1 %v4174_v4  ;;  %v4194_v40 = vld [vmem:[%s4525_s3 + $0x180] sm:$0xff]   ;;  %v4206_v52 = vld [vmem:[#allocation2 + $0x38] sm:$0xe] }
  0x5c   : > { %v1522_v13 = vshll.u32 %v1418_v54, 16  ;;  %v3064_v12 = vrot.slane %v1687_v60, 9  ;;  %v3065_v43 = vrot.slane %v4176_v5, 9  ;;  %v723_v29 = vsel %vm3979_vm8, %v718_v56, %v722_v1  ;;  %3524 = vmatpush3.bf16.msra.mxu0 %v3720_v20  ;;  %v1690_v54 = vld [vmem:[#allocation2 + $0x28] sm:$0xe] }
  0x5d   : > { %3507 = vmatprep.mubr.bf16.mxu0 %v3053_v8  ;;  %v732_v50 = vrot.slane %v731_v14, 4  ;;  %v1521_v42 = vrot.slane %v1519_v26, 4  ;;  %v1528_v45 = vshll.u32 %v4180_v61, 16  ;;  %v1511_v62 = vor.u32 %v1510_v25, %v1507_v22  ;;  %3525 = vmatprep.subr.bf16.mxu0 %v3722_v35  ;;  %v1691_v1 = vld [vmem:[#allocation2 + $0x30] sm:$0xe] }
  0x5e   : > { %v1516_v60 = vrot.slane %v1514_v16, 5  ;;  %v1524_v0 = vrot.slane %v1522_v13, 5  ;;  %v2959_v5 = vcombine.low %v3909_v18, %v3995_v36  ;;  %v1021_v14 = vld [vmem:[#allocation2] sm:$0xe]  ;;  %v1713_v22 = vsel %vm4198_vm11, %v3063_v6, %v1712_v10  ;;  %v1022_v26 = vld [vmem:[#allocation2 + $0x8] sm:$0xe] }
  0x5f   : > { %v737_v20 = vsel %vm3979_vm8, %v732_v50, %v736_v11  ;;  %v1512_v15 = vrot.slane %v1511_v62, 4  ;;  %v1530_v8 = vrot.slane %v1528_v45, 5  ;;  %v1717_v18 = vsel %vm4198_vm11, %v3064_v12, %v1716_v58  ;;  %v1024_v58 = vld [vmem:[#allocation2 + $0x18] sm:$0xe] }
  0x60   : > { %v2950_v56 = vcombine.low %v723_v29, %v737_v20  ;;  %v1525_v16 = vor.u32 %v1524_v0, %v1521_v42  ;;  %3526 = vmatpush3.bf16.msra.mxu0 %v3722_v35  ;;  %v3066_v36 = vrot.slane %v1689_v44, 9  ;;  %v3067_v11 = vrot.slane %v1690_v54, 9  ;;  %v3735_v20 = vld [vmem:[%s4525_s3 + $0xa8] sm:$0xff]  }
  0x61   : > { %v1517_v25 = vsel %vm3979_vm8, %v1512_v15, %v1516_v60  ;;  %3535 = vmatprep.subr.bf16.mxu0 %v4194_v40  ;;  %v1728_v46 = vrot.slane %v4128_v17, 5  ;;  %v3068_v10 = vrot.slane %v1691_v1, 9  ;;  %v1732_v48 = vrot.slane %v4130_v21, 5  ;;  %v3727_v21 = vld [vmem:[%s4525_s3 + $0x88] sm:$0xff]   ;;  %v3744_v1 = vld [vmem:[#allocation2 + $0x10] ss:$8 sps:$4 sm:$0xff]  }
  0x62   : > { %3412 = vmatmul.mubr.bf16.gmra.mrb[4].mxu1 %v2950_v56  ;;  %v1526_v35 = vrot.slane %v1525_v16, 4  ;;  %v3069_v6 = vrot.slane %v4206_v52, 9  ;;  %v2973_v13 = vrot.slane %v1023_v41, 9  ;;  %v3087_v44 = vcombine.low %v1713_v22, %v1717_v18  ;;  %v1025_v52 = vld [vmem:[#allocation2 + $0x20] sm:$0xe]  ;;  %v3738_v15 = vld [vmem:[%s4525_s3 + $0xb0] sm:$0xff]  }
  0x63   : > { %3431 = vmatprep.mubr.bf16.mxu1 %v2959_v5  ;;  %v1736_v29 = vrot.slane %v4167_v30, 5  ;;  %v2974_v50 = vrot.slane %v1024_v58, 9  ;;  %v2971_v45 = vrot.slane %v1021_v14, 9  ;;  %v2972_v54 = vrot.slane %v1022_v26, 9  ;;  %v3734_v5 = vld [vmem:[%s4525_s3 + $0x1a0] sm:$0xff]   ;;  %v3736_v16 = vld [vmem:[%s4525_s3 + $0x1a8] sm:$0xff]  }
  0x64   : > { %v1531_v12 = vsel %vm3979_vm8, %v1526_v35, %v1530_v8  ;;  %v2960_v17 = vcombine.low %v4014_v63, %v4020_v9  ;;  %v4236_v62 = vsel %vm4198_vm11, %v2973_v13, %v1058_v28  ;;  %v2961_v63 = vcombine.low %v4055_v23, %v4118_v53  ;;  %v1693_v9 = vld [vmem:[#allocation2 + $0x40] sm:$0xe]  ;;  %v1026_v56 = vld [vmem:[#allocation2 + $0x28] sm:$0xe]  ;;  %v3741_v22 = vld [vmem:[%s4525_s3 + $0xb8] sm:$0xff]  }
  0x65   : > { %v3054_v42 = vcombine.low %v1517_v25, %v1531_v12  ;;  %v4242_v30 = vsel %vm4198_vm11, %v2974_v50, %v1062_v24  ;;  %v1721_v3 = vsel %vm4198_vm11, %v3065_v43, %v1720_v38  ;;  %v1725_v19 = vsel %vm4198_vm11, %v3066_v36, %v1724_v49  ;;  %v3739_v26 = vld [vmem:[%s4525_s3 + $0x1b0] sm:$0xff]   ;;  %v2069_v35 = vld [vmem:[#allocation2 + $0x18] sm:$0xf] }
  0x66   : > { %v2996_v60 = vcombine.low %v4236_v62, %v4242_v30  ;;  %v1729_v28 = vsel %vm4198_vm11, %v3067_v11, %v1728_v46  ;;  %v1733_v23 = vsel %vm4198_vm11, %v3068_v10, %v1732_v48  ;;  %v3088_v24 = vcombine.low %v1721_v3, %v1725_v19  ;;  %v2067_v11 = vld [vmem:[#allocation2 + $0x10] sm:$0xf]  ;;  %v3742_v48 = vld [vmem:[%s4525_s3 + $0x1b8] sm:$0xff]   ;;  %v3748_v62 = vld [vmem:[%s4525_s3 + $0x1c8] sm:$0xff]  }
  0x67   : > { %3508 = vmatmul.mubr.bf16.gmra.mrb[4].mxu0 %v3054_v42  ;;  %v3070_v47 = vrot.slane %v1693_v9, 9  ;;  %v1740_v38 = vrot.slane %v4180_v61, 5  ;;  %v1051_v49 = vsel %vm4198_vm11, %v2971_v45, %v1050_v32  ;;  %v1055_v53 = vsel %vm4198_vm11, %v2972_v54, %v1054_v51  ;;  %v3730_v51 = vld [vmem:[%s4525_s3 + $0x190] sm:$0xff]   ;;  %v4335_v9 = vld [vmem:[#allocation2 + $0x1c] sm:$0x1] }
  0x68   : > { %3527 = vmatprep.mubr.bf16.mxu0 %v3087_v44  ;;  %v3089_v43 = vcombine.low %v1729_v28, %v1733_v23  ;;  %v2962_v0 = vcombine.low %v4137_v34, %v4147_v57  ;;  %v2995_v61 = vcombine.low %v1051_v49, %v1055_v53  ;;  %v1737_v32 = vsel %vm4198_vm11, %v3069_v6, %v1736_v29  ;;  %v3732_v34 = vld [vmem:[%s4525_s3 + $0x198] sm:$0xff]   ;;  %v1027_v25 = vld [vmem:[#allocation2 + $0x30] sm:$0xe]  ;;  %v3743_v6 = vld [vmem:[%s4525_s3 + $0xc0] sm:$0xff]  }
  0x69   : > { %v1741_v37 = vsel %vm4198_vm11, %v3070_v47, %v1740_v38  ;;  %v1066_v8 = vrot.slane %v4061_v31, 5  ;;  %v1070_v14 = vrot.slane %v4120_v7, 5  ;;  %v2975_v18 = vrot.slane %v1025_v52, 9  ;;  %v1028_v31 = vld [vmem:[#allocation2 + $0x38] sm:$0xe]  ;;  %v3749_v38 = vld [vmem:[%s4525_s3 + $0xd0] sm:$0xff]  }
  0x6a   : > { %3432 = vmatmul.mubr.bf16.vlgmr.msra.gmra.mrb[0].mxu1 %v2960_v17  ;;  %v3090_v57 = vcombine.low %v1737_v32, %v1741_v37  ;;  %v2976_v36 = vrot.slane %v1026_v56, 9  ;;  %v2084_v7 = vshrl.u32 %v2067_v11, 16  ;;  %v2087_v46 = vshll.u32 %v2067_v11, 16  ;;  %v3746_v47 = vld [vmem:[#allocation2 + $0x20] ss:$8 sps:$4 sm:$0xff]  }
  0x6b   : > { %3440 = vmatpush3.bf16.msra.mxu1 %v4174_v4  ;;  %3435 = vmatprep.mubr.bf16.mxu1 %v2961_v63  ;;  %v3728_v4 = vld [vmem:[%s4525_s3 + $0x188] sm:$0xff]   ;;  %v2098_v41 = vshrl.u32 %v2069_v35, 16  ;;  %v2101_v10 = vshll.u32 %v2069_v35, 16  ;;  %v1067_v58 = vsel %vm4198_vm11, %v2975_v18, %v1066_v8  ;;  %v2977_v12 = vrot.slane %v1027_v25, 9  ;;  %v4333_v63 = vld [vmem:[#allocation2 + $0x14] sm:$0x1] }
  0x6c   : > { %3441 = vmatprep.subr.bf16.mxu1 %v3727_v21  ;;  %v1071_v13 = vsel %vm4198_vm11, %v2976_v36, %v1070_v14  ;;  %v1074_v44 = vrot.slane %v4149_v59, 5  ;;  %v2978_v29 = vrot.slane %v1028_v31, 9  ;;  %v1078_v50 = vrot.slane %v4152_v2, 5  ;;  %v3747_v59 = vld [vmem:[%s4525_s3 + $0xc8] sm:$0xff]   ;;  %v3745_v2 = vld [vmem:[%s4525_s3 + $0x1c0] sm:$0xff]   ;;  %v3757_v35 = vld [vmem:[%s4525_s3 + $0xf0] sm:$0xff]  }
  0x6d   : > { %v2086_v42 = vrot.slane %v2084_v7, 4  ;;  %v2089_v45 = vrot.slane %v2087_v46, 5  ;;  %v2100_v54 = vrot.slane %v2098_v41, 4  ;;  %v2103_v17 = vrot.slane %v2101_v10, 5  ;;  %v2077_v52 = vld [vmem:[#allocation2 + $0x38] sm:$0xf] }
  0x6e   : > { %v1075_v3 = vsel %vm4198_vm11, %v2977_v12, %v1074_v44  ;;  %v1079_v19 = vsel %vm4198_vm11, %v2978_v29, %v1078_v50  ;;  %v2093_v23 = vshll.u32 %v4333_v63, 16  ;;  %v3755_v14 = vld [vmem:[%s4525_s3 + $0xe8] sm:$0xff]   ;;  %v3754_v36 = vld [vmem:[%s4525_s3 + $0x1e0] sm:$0xff]   ;;  %v2154_v11 = vshrl.u32 %v2077_v52, 16  ;;  %v4390_v50 = vld [vmem:[#allocation2 + $0x34] sm:$0x1] }
  0x6f   : > { %3528 = vmatmul.mubr.bf16.vlgmr.msra.gmra.mrb[0].mxu0 %v3088_v24  ;;  %3442 = vmatpush3.bf16.msra.mxu1 %v3727_v21  ;;  %v2997_v21 = vcombine.low %v1067_v58, %v1071_v13  ;;  %v2090_v28 = vor.u32 %v2089_v45, %v2086_v42  ;;  %v2104_v24 = vor.u32 %v2103_v17, %v2100_v54  ;;  %v3756_v25 = vld [vmem:[%s4525_s3 + $0x1e8] sm:$0xff]   ;;  %v4386_v10 = vld [vmem:[#allocation2 + $0x24] sm:$0x1]  ;;  %v2079_v44 = vld [vmem:[#allocation2 + $0x40] sm:$0xf] }
  0x70   : > { %3536 = vmatpush3.bf16.msra.mxu0 %v4194_v40  ;;  %3443 = vmatprep.subr.bf16.mxu1 %v3729_v33  ;;  %v3733_v40 = vld [vmem:[%s4525_s3 + $0xa0] sm:$0xff]   ;;  %v2998_v30 = vcombine.low %v1075_v3, %v1079_v19  ;;  %v2095_v53 = vrot.slane %v2093_v23, 5  ;;  %v2156_v13 = vrot.slane %v2154_v11, 4  ;;  %v2081_v29 = vld [vmem:[#allocation2 + $0x48] sm:$0xf]  ;;  %v2121_v54 = vshll.u32 %v4386_v10, 16 }
  0x71   : > { %3537 = vmatprep.subr.bf16.mxu0 %v3728_v4  ;;  %3531 = vmatprep.mubr.bf16.mxu0 %v3089_v43  ;;  %v2091_v49 = vrot.slane %v2090_v28, 4  ;;  %v4392_v42 = vld [vmem:[#allocation2 + $0x3c] sm:$0x1]  ;;  %v2171_v3 = vshll.u32 %v2079_v44, 16  ;;  %v2182_v19 = vshrl.u32 %v2081_v29, 16  ;;  %v2185_v28 = vshll.u32 %v2081_v29, 16 }
  0x72   : > { %3436 = vmatmul.mubr.bf16.gmra.mrb[4].mxu1 %v2962_v0  ;;  %v3763_v0 = vld [vmem:[#allocation2 + $0x8] ss:$8 sps:$4 sm:$0xff]   ;;  %v3768_v29 = vld [vmem:[#allocation2 + $0x38] ss:$8 sps:$4 sm:$0xff]  }
  0x73   : > { %3444 = vmatpush3.bf16.msra.mxu1 %v3729_v33  ;;  %3455 = vmatprep.mubr.bf16.mxu1 %v2995_v61  ;;  %v2107_v33 = vshll.u32 %v4335_v9, 16  ;;  %v3751_v61 = vld [vmem:[%s4525_s3 + $0xd8] sm:$0xff]   ;;  %v2096_v32 = vsel %vm3979_vm8, %v2091_v49, %v2095_v53  ;;  %v3759_v23 = vld [vmem:[%s4525_s3 + $0x1f0] sm:$0xff]  }
  0x74   : > { %3538 = vmatpush3.bf16.msra.mxu0 %v3728_v4  ;;  %3445 = vmatprep.subr.bf16.mxu1 %v3731_v39  ;;  %v2105_v4 = vrot.slane %v2104_v24, 4  ;;  %v2349_v11 = vld [vmem:[#allocation2 + $0x10] sm:$0xe] }
  0x75   : > { %3539 = vmatprep.subr.bf16.mxu0 %v3730_v51  ;;  %v2109_v43 = vrot.slane %v2107_v33, 5  ;;  %v2149_v33 = vshll.u32 %v4390_v50, 16 }
  0x77   : > { %3446 = vmatpush3.bf16.msra.mxu1 %v3731_v39  ;;  %3532 = vmatmul.mubr.bf16.gmra.mrb[4].mxu0 %v3090_v57  ;;  %v3750_v39 = vld [vmem:[%s4525_s3 + $0x1d0] sm:$0xff]   ;;  %v2110_v37 = vsel %vm3979_vm8, %v2105_v4, %v2109_v43  ;;  %v2071_v57 = vld [vmem:[#allocation2 + $0x20] sm:$0xf]  ;;  %v4410_v43 = vld [vmem:[#allocation2 + $0x44] sm:$0x1] }
  0x78   : > { %3540 = vmatpush3.bf16.msra.mxu0 %v3730_v51  ;;  %3447 = vmatprep.subr.bf16.mxu1 %v3733_v40  ;;  %v3760_v51 = vld [vmem:[#allocation2 + $0x40] ss:$8 sps:$4 sm:$0xff]   ;;  %v2112_v56 = vshrl.u32 %v2071_v57, 16 }
  0x79   : > { %3541 = vmatprep.subr.bf16.mxu0 %v3732_v34  ;;  %3551 = vmatprep.mubr.bf16.mxu0 %v3744_v1  ;;  %v3752_v1 = vld [vmem:[%s4525_s3 + $0x1d8] sm:$0xff]   ;;  %v2617_v4 = vld [vmem:[%s4527_s5] sm:$0x3] }
  0x7a   : > { %v2114_v31 = vrot.slane %v2112_v56, 4  ;;  %v2177_v56 = vshll.u32 %v4410_v43, 16 }
  0x7b   : > { %3448 = vmatpush3.bf16.msra.mxu1 %v3733_v40  ;;  %v2073_v40 = vld [vmem:[#allocation2 + $0x28] sm:$0xf] }
  0x7c   : > { %3542 = vmatpush3.bf16.msra.mxu0 %v3732_v34  ;;  %3449 = vmatprep.subr.bf16.mxu1 %v3735_v20  ;;  %v3753_v34 = vld [vmem:[%s4525_s3 + $0xe0] sm:$0xff]   ;;  %v2129_v8 = vshll.u32 %v2073_v40, 16 }
  0x7d   : > { %3543 = vmatprep.subr.bf16.mxu0 %v3734_v5 }
  0x7e   : > { %v2131_v41 = vrot.slane %v2129_v8, 5 }
  0x7f   : > { %3450 = vmatpush3.bf16.msra.mxu1 %v3735_v20  ;;  %v3143_v20 = vcombine.low %v2096_v32, %v2110_v37  ;;  %v2187_v32 = vrot.slane %v2185_v28, 5  ;;  %v3771_v28 = vld [vmem:[%s4525_s3 + $0x220] sm:$0xff]  }
  0x80   : > { %3544 = vmatpush3.bf16.msra.mxu0 %v3734_v5  ;;  %3451 = vmatprep.subr.bf16.mxu1 %v3738_v15  ;;  %v2075_v5 = vld [vmem:[#allocation2 + $0x30] sm:$0xf] }
  0x81   : > { %3545 = vmatprep.subr.bf16.mxu0 %v3736_v16  ;;  %v2143_v18 = vshll.u32 %v2075_v5, 16 }
  0x83   : > { %3452 = vmatpush3.bf16.msra.mxu1 %v3738_v15  ;;  %v2115_v15 = vshll.u32 %v2071_v57, 16  ;;  %v2145_v58 = vrot.slane %v2143_v18, 5 }
  0x84   : > { %3546 = vmatpush3.bf16.msra.mxu0 %v3736_v16  ;;  %3453 = vmatprep.subr.bf16.mxu1 %v3741_v22  ;;  %v2126_v16 = vshrl.u32 %v2073_v40, 16  ;;  %v4412_v40 = vld [vmem:[#allocation2 + $0x4c] sm:$0x1] }
  0x85   : > { %3547 = vmatprep.subr.bf16.mxu0 %v3739_v26  ;;  %v2117_v7 = vrot.slane %v2115_v15, 5  ;;  %v2653_v15 = vsel %vm2651_vm12, %v2617_v4, 0 }
  0x86   : > { %v2128_v46 = vrot.slane %v2126_v16, 4 }
  0x87   : > { %3454 = vmatpush3.bf16.msra.mxu1 %v3741_v22  ;;  %v2140_v22 = vshrl.u32 %v2075_v5, 16  ;;  %v2118_v45 = vor.u32 %v2117_v7, %v2114_v31 }
  0x88   : > { %3548 = vmatpush3.bf16.msra.mxu0 %v3739_v26  ;;  %3463 = vmatprep.subr.bf16.mxu1 %v3743_v6  ;;  %v2157_v26 = vshll.u32 %v2077_v52, 16  ;;  %v2132_v17 = vor.u32 %v2131_v41, %v2128_v46  ;;  %v3767_v52 = vld [vmem:[#allocation2 + $0x28] ss:$8 sps:$4 sm:$0xff]  }
  0x89   : > { %3549 = vmatprep.subr.bf16.mxu0 %v3742_v48 }
  0x8a   : > { %3456 = vmatmul.mubr.bf16.vlgmr.msra.gmra.mrb[0].mxu1 %v2996_v60  ;;  %v3758_v60 = vld [vmem:[#allocation2 + $0x30] ss:$8 sps:$4 sm:$0xff]   ;;  %v2159_v12 = vrot.slane %v2157_v26, 5  ;;  %v2133_v49 = vrot.slane %v2132_v17, 4 }
  0x8b   : > { %3464 = vmatpush3.bf16.msra.mxu1 %v3743_v6  ;;  %3459 = vmatprep.mubr.bf16.mxu1 %v2997_v21  ;;  %v2142_v6 = vrot.slane %v2140_v22, 4  ;;  %v3765_v22 = vld [vmem:[%s4525_s3 + $0x200] sm:$0xff]   ;;  %v2350_v26 = vld [vmem:[#allocation2 + $0x18] sm:$0xe] }
  0x8c   : > { %3550 = vmatpush3.bf16.msra.mxu0 %v3742_v48  ;;  %3465 = vmatprep.subr.bf16.mxu1 %v3747_v59  ;;  %v4388_v48 = vld [vmem:[#allocation2 + $0x2c] sm:$0x1] }
  0x8d   : > { %3559 = vmatprep.subr.bf16.mxu0 %v3745_v2  ;;  %v2135_v21 = vshll.u32 %v4388_v48, 16  ;;  %v2146_v24 = vor.u32 %v2145_v58, %v2142_v6  ;;  %v3766_v6 = vld [vmem:[%s4525_s3 + $0x208] sm:$0xff]   ;;  %v3155_v58 = vrot.slane %v2349_v11, 9 }
  0x8f   : > { %3552 = vmatmul.mubr.bf16.vlgmr.msra.gmra.mrb[0].mxu0 %v3746_v47  ;;  %3466 = vmatpush3.bf16.msra.mxu1 %v3747_v59  ;;  %v3761_v59 = vld [vmem:[%s4525_s3 + $0xf8] sm:$0xff]   ;;  %v2160_v47 = vor.u32 %v2159_v12, %v2156_v13  ;;  %v2137_v53 = vrot.slane %v2135_v21, 5  ;;  %v2147_v37 = vrot.slane %v2146_v24, 4  ;;  %v2375_v13 = vrot.slane %v4333_v63, 5  ;;  %v3769_v63 = vld [vmem:[%s4525_s3 + $0x210] sm:$0xff]  }
  0x90   : > { %3560 = vmatpush3.bf16.msra.mxu0 %v3745_v2  ;;  %3467 = vmatprep.subr.bf16.mxu1 %v3749_v38  ;;  %v2168_v2 = vshrl.u32 %v2079_v44, 16  ;;  %v3156_v12 = vrot.slane %v2350_v26, 9  ;;  %v2379_v44 = vrot.slane %v4335_v9, 5  ;;  %v3778_v24 = vld [vmem:[%s4330_s20 + $0x18] sm:$0xff]  }
  0x91   : > { %3561 = vmatprep.subr.bf16.mxu0 %v3748_v62  ;;  %3555 = vmatprep.mubr.bf16.mxu0 %v3758_v60  ;;  %v2123_v60 = vrot.slane %v2121_v54, 5  ;;  %v2138_v5 = vsel %vm3979_vm8, %v2133_v49, %v2137_v53  ;;  %v2376_v9 = vsel %vm4198_vm11, %v3155_v58, %v2375_v13  ;;  %v2383_v49 = vrot.slane %v4386_v10, 5 }
  0x92   : > { %3460 = vmatmul.mubr.bf16.gmra.mrb[4].mxu1 %v2998_v30  ;;  %v2119_v30 = vrot.slane %v2118_v45, 4  ;;  %v3773_v45 = vld [vmem:[%s4330_s20] sm:$0xff]   ;;  %v2380_v21 = vsel %vm4198_vm11, %v3156_v12, %v2379_v44 }
  0x93   : > { %3468 = vmatpush3.bf16.msra.mxu1 %v3749_v38  ;;  %3479 = vmatprep.mubr.bf16.mxu1 %v3763_v0  ;;  %v2163_v38 = vshll.u32 %v4392_v42, 16  ;;  %v2170_v0 = vrot.slane %v2168_v2, 4  ;;  %v3179_v2 = vcombine.low %v2376_v9, %v2380_v21 }
  0x94   : > { %3562 = vmatpush3.bf16.msra.mxu0 %v3748_v62  ;;  %3469 = vmatprep.subr.bf16.mxu1 %v3751_v61  ;;  %v3762_v62 = vld [vmem:[%s4525_s3 + $0x1f8] sm:$0xff]  }
  0x95   : > { %3563 = vmatprep.subr.bf16.mxu0 %v3750_v39  ;;  %v2165_v57 = vrot.slane %v2163_v38, 5  ;;  %v2352_v38 = vld [vmem:[#allocation2 + $0x28] sm:$0xe] }
  0x96   : > { %v3158_v53 = vrot.slane %v2352_v38, 9 }
  0x97   : > { %3470 = vmatpush3.bf16.msra.mxu1 %v3751_v61  ;;  %3556 = vmatmul.mubr.bf16.gmra.mrb[4].mxu0 %v3760_v51  ;;  %v2173_v61 = vrot.slane %v2171_v3, 5  ;;  %v2151_v51 = vrot.slane %v2149_v33, 5  ;;  %v3774_v3 = vld [vmem:[%s4330_s20 + $0x8] sm:$0xff]   ;;  %v3775_v33 = vld [vmem:[%s4525_s3 + $0x230] sm:$0xff]  }
  0x98   : > { %3564 = vmatpush3.bf16.msra.mxu0 %v3750_v39  ;;  %3471 = vmatprep.subr.bf16.mxu1 %v3753_v34  ;;  %v2184_v39 = vrot.slane %v2182_v19, 4  ;;  %v3777_v19 = vld [vmem:[%s4330_s20 + $0x10] sm:$0xff]  }
  0x99   : > { %3565 = vmatprep.subr.bf16.mxu0 %v3752_v1  ;;  %3575 = vmatprep.mubr.bf16.mxu0 %v3143_v20  ;;  %v2124_v20 = vsel %vm3979_vm8, %v2119_v30, %v2123_v60  ;;  %v2174_v16 = vor.u32 %v2173_v61, %v2170_v0  ;;  %v2152_v18 = vsel %vm3979_vm8, %v2147_v37, %v2151_v51  ;;  %v2354_v30 = vld [vmem:[#allocation2 + $0x38] sm:$0xe]  ;;  %v2395_v37 = vrot.slane %v4392_v42, 5 }
  0x9a   : > { %v2188_v8 = vor.u32 %v2187_v32, %v2184_v39  ;;  %v3776_v0 = vld [vmem:[%s4525_s3 + $0x238] sm:$0xff]   ;;  %v2391_v39 = vrot.slane %v4390_v50, 5  ;;  %v3160_v32 = vrot.slane %v2354_v30, 9 }
  0x9b   : > { %3472 = vmatpush3.bf16.msra.mxu1 %v3753_v34  ;;  %v2161_v34 = vrot.slane %v2160_v47, 4  ;;  %v2175_v7 = vrot.slane %v2174_v16, 4  ;;  %v2351_v47 = vld [vmem:[#allocation2 + $0x20] sm:$0xe] }
  0x9c   : > { %3566 = vmatpush3.bf16.msra.mxu0 %v3752_v1  ;;  %3473 = vmatprep.subr.bf16.mxu1 %v3755_v14  ;;  %v3764_v1 = vld [vmem:[#allocation2 + $0x18] ss:$8 sps:$4 sm:$0xff]   ;;  %v2189_v46 = vrot.slane %v2188_v8, 4  ;;  %v3157_v60 = vrot.slane %v2351_v47, 9 }
  0x9d   : > { %3567 = vmatprep.subr.bf16.mxu0 %v3754_v36 }
  0x9e   : > { %v2384_v51 = vsel %vm4198_vm11, %v3157_v60, %v2383_v49 }
  0x9f   : > { %3474 = vmatpush3.bf16.msra.mxu1 %v3755_v14  ;;  %v2191_v14 = vshll.u32 %v4412_v40, 16 }
  0xa0   : > { %3568 = vmatpush3.bf16.msra.mxu0 %v3754_v36  ;;  %3475 = vmatprep.subr.bf16.mxu1 %v3757_v35  ;;  %v2166_v36 = vsel %vm3979_vm8, %v2161_v34, %v2165_v57  ;;  %v2355_v34 = vld [vmem:[#allocation2 + $0x40] sm:$0xe]  ;;  %v2396_v57 = vsel %vm4198_vm11, %v3160_v32, %v2395_v37 }
  0xa1   : > { %3569 = vmatprep.subr.bf16.mxu0 %v3756_v25  ;;  %v3145_v31 = vcombine.low %v2152_v18, %v2166_v36  ;;  %v2193_v41 = vrot.slane %v2191_v14, 5 }
  0xa3   : > { %3476 = vmatpush3.bf16.msra.mxu1 %v3757_v35  ;;  %v2179_v35 = vrot.slane %v2177_v56, 5  ;;  %v2194_v17 = vsel %vm3979_vm8, %v2189_v46, %v2193_v41  ;;  %v2403_v56 = vrot.slane %v4412_v40, 5 }
  0xa4   : > { %3570 = vmatpush3.bf16.msra.mxu0 %v3756_v25  ;;  %3477 = vmatprep.subr.bf16.mxu1 %v3761_v59  ;;  %v3144_v25 = vcombine.low %v2124_v20, %v2138_v5  ;;  %v3161_v20 = vrot.slane %v2355_v34, 9  ;;  %v2399_v5 = vrot.slane %v4410_v43, 5 }
  0xa5   : > { %3571 = vmatprep.subr.bf16.mxu0 %v3759_v23  ;;  %v2180_v54 = vsel %vm3979_vm8, %v2175_v7, %v2179_v35 }
  0xa7   : > { %3478 = vmatpush3.bf16.msra.mxu1 %v3761_v59  ;;  %v3146_v59 = vcombine.low %v2180_v54, %v2194_v17 }
  0xa8   : > { %3572 = vmatpush3.bf16.msra.mxu0 %v3759_v23  ;;  %3681 = vmatprep.subr.msk.bf16.mxu1 %vm2651_vm12, %v2617_v4  ;;  %v3772_v23 = vld [vmem:[%s4525_s3 + $0x228] sm:$0xff]   ;;  %v2387_v4 = vrot.slane %v4388_v48, 5 }
  0xa9   : > { %3573 = vmatprep.subr.bf16.mxu0 %v3762_v62 }
  0xaa   : > { %3480 = vmatmul.mubr.bf16.vlgmr.msra.gmra.mrb[0].mxu1 %v3764_v1  ;;  %v2388_v10 = vsel %vm4198_vm11, %v3158_v53, %v2387_v4  ;;  %v2356_v1 = vld [vmem:[#allocation2 + $0x48] sm:$0xe] }
  0xab   : > { %3483 = vmatprep.mubr.bf16.mxu1 %v3767_v52  ;;  %3608 = vmatpush3.bf16.msra.mxu1 %v2653_v15  ;;  %v3180_v50 = vcombine.low %v2384_v51, %v2388_v10  ;;  %v3162_v52 = vrot.slane %v2356_v1, 9  ;;  %v2400_v15 = vsel %vm4198_vm11, %v3161_v20, %v2399_v5 }
  0xac   : > { %3574 = vmatpush3.bf16.msra.mxu0 %v3762_v62  ;;  %v2353_v62 = vld [vmem:[#allocation2 + $0x30] sm:$0xe] }
  0xad   : > { %3583 = vmatprep.subr.bf16.mxu0 %v3765_v22  ;;  %v3159_v61 = vrot.slane %v2353_v62, 9  ;;  %v2404_v16 = vsel %vm4198_vm11, %v3162_v52, %v2403_v56 }
  0xae   : > { %v3182_v8 = vcombine.low %v2400_v15, %v2404_v16 }
  0xaf   : > { %3576 = vmatmul.mubr.bf16.vlgmr.msra.gmra.mrb[0].mxu0 %v3144_v25  ;;  %v2392_v48 = vsel %vm4198_vm11, %v3159_v61, %v2391_v39 }
  0xb0   : > { %3584 = vmatpush3.bf16.msra.mxu0 %v3765_v22  ;;  %3579 = vmatprep.mubr.bf16.mxu0 %v3145_v31  ;;  %v3181_v42 = vcombine.low %v2392_v48, %v2396_v57 }
  0xb1   : > { %3585 = vmatprep.subr.bf16.mxu0 %v3766_v6 }
  0xb2   : > { %3484 = vmatmul.mubr.bf16.gmra.mrb[4].mxu1 %v3768_v29 }
  0xb3   : > { %3609 = vmatprep.mubr.msk.bf16.mxu1 %vm2638_vm13, %v3773_v45 }
  0xb4   : > { %3586 = vmatpush3.bf16.msra.mxu0 %v3766_v6 }
  0xb5   : > { %3587 = vmatprep.subr.bf16.mxu0 %v3769_v63 }
  0xb7   : > { %3580 = vmatmul.mubr.bf16.gmra.mrb[4].mxu0 %v3146_v59 }
  0xb8   : > { %3588 = vmatpush3.bf16.msra.mxu0 %v3769_v63  ;;  %3599 = vmatprep.mubr.bf16.mxu0 %v3179_v2 }
  0xb9   : > { %3589 = vmatprep.subr.bf16.mxu0 %v3770_v27 }
  0xba   : > { %3610 = vmatmul.mubr.msk.bf16.vlgmr.msra.gmra.mrb[8].mxu1 %vm2638_vm13, %v3774_v3 }
  0xbb   : > { %3613 = vmatprep.mubr.msk.bf16.mxu1 %vm2638_vm13, %v3777_v19 }
  0xbc   : > { %3590 = vmatpush3.bf16.msra.mxu0 %v3770_v27 }
  0xbd   : > { %3591 = vmatprep.subr.bf16.mxu0 %v3771_v28 }
  0xc0   : > { %3592 = vmatpush3.bf16.msra.mxu0 %v3771_v28 }
  0xc1   : > { %3593 = vmatprep.subr.bf16.mxu0 %v3772_v23 }
  0xc2   : > { %3614 = vmatmul.mubr.msk.bf16.gmra.mrb[12].mxu1 %vm2638_vm13, %v3778_v24 }
  0xc4   : > { %3594 = vmatpush3.bf16.msra.mxu0 %v3772_v23 }
  0xc5   : > { %3595 = vmatprep.subr.bf16.mxu0 %v3775_v33 }
  0xc8   : > { %3596 = vmatpush3.bf16.msra.mxu0 %v3775_v33 }
  0xc9   : > { %3597 = vmatprep.subr.bf16.mxu0 %v3776_v0 }
  0xcc   : > { %3598 = vmatpush3.bf16.msra.mxu0 %v3776_v0 }
  0xcf   : > { %3600 = vmatmul.mubr.bf16.vlgmr.msra.gmra.mrb[0].mxu0 %v3180_v50 }
  0xd0   : > { %3603 = vmatprep.mubr.bf16.mxu0 %v3181_v42 }
  0xd7   : > { %3604 = vmatmul.mubr.bf16.gmra.mrb[4].mxu0 %v3182_v8 }
 0x17d   : > { %v3481_v14 = vpop.f32.mrb[0].mxu1 }
 0x17e   : > { %v1365_v22 = vpop.f32.mrb[1].mxu1 }
 0x17f   : > { %v3482_v18 = vpop.f32.mrb[2].mxu1 }
 0x180   : > { %v1368_v36 = vpop.f32.mrb[3].mxu1 }
 0x185   : > { %v4486_v11 = vpop.f32.mrb[4].mxu1 }
 0x186   : > { %v4488_v43 = vpop.f32.mrb[5].mxu1 }
 0x187   : > { %v4490_v40 = vpop.f32.mrb[6].mxu1 }
 0x188   : > { %v4492_v26 = vpop.f32.mrb[7].mxu1 }
 0x18d   : > { %v3611_v25 = vpop.f32.mrb[8].mxu1 }
 0x18e   : > { %v2689_v35 = vpop.f32.mrb[9].mxu1  ;;  %v2751_v41 = vmul.f32 %v3611_v25, %v3611_v25 }
 0x18f   : > { %v2749_v31 = vmul.f32 %v2689_v35, %v2689_v35  ;;  %v3612_v55 = vpop.f32.mrb[10].mxu1 }
 0x190   : > { %v3257_v7 = vpack.c.bf16 %v3612_v55, %v3611_v25  ;;  %v2692_v46 = vpop.f32.mrb[11].mxu1  ;;  %v2752_v12 = vmul.f32 %v3612_v55, %v3612_v55 }
 0x191   : > { %v3252_v6 = vpack.c.bf16 %v2692_v46, %v2689_v35  ;;  %v2736_v58 = vadd.f32 %v2692_v46, %v2689_v35  ;;  %v2750_v13 = vmul.f32 %v2692_v46, %v2692_v46 }
 0x192   : > { %3275 = vst [vmem:[%s344_s15 + $0x8] sm:$0xff] %v3257_v7  }
 0x193   : > { %3253 = vst [vmem:[%s344_s15] sm:$0xff] %v3252_v6   ;;  %v2737_v44 = vadd.f32 %v3611_v25, %v2736_v58  ;;  %v2757_v29 = vadd.f32 %v2750_v13, %v2749_v31 }
 0x195   : > { %v2758_v45 = vadd.f32 %v2757_v29, %v2751_v41  ;;  %v3615_v54 = vpop.f32.mrb[12].mxu1  ;;  %v2738_v17 = vadd.f32 %v3612_v55, %v2737_v44 }
 0x196   : > { %v2705_v63 = vpop.f32.mrb[13].mxu1  ;;  %v2755_v27 = vmul.f32 %v3615_v54, %v3615_v54 }
 0x197   : > { %v2739_v9 = vadd.f32 %v2738_v17, %v2705_v63  ;;  %v2753_v21 = vmul.f32 %v2705_v63, %v2705_v63  ;;  %v2759_v59 = vadd.f32 %v2758_v45, %v2752_v12  ;;  %v3616_v2 = vpop.f32.mrb[14].mxu1 }
 0x198   : > { %v3267_v3 = vpack.c.bf16 %v3616_v2, %v3615_v54  ;;  %v2708_v19 = vpop.f32.mrb[15].mxu1  ;;  %v2756_v47 = vmul.f32 %v3616_v2, %v3616_v2 }
 0x199   : > { %v2760_v28 = vadd.f32 %v2759_v59, %v2753_v21  ;;  %v3262_v23 = vpack.c.bf16 %v2708_v19, %v2705_v63  ;;  %v2740_v24 = vadd.f32 %v2739_v9, %v2708_v19  ;;  %v2754_v33 = vmul.f32 %v2708_v19, %v2708_v19 }
 0x19a   : > { %3277 = vst [vmem:[%s344_s15 + $0x18] sm:$0xff] %v3267_v3  }
 0x19b   : > { %3276 = vst [vmem:[%s344_s15 + $0x10] sm:$0xff] %v3262_v23   ;;  %v2741_v38 = vadd.f32 %v3615_v54, %v2740_v24  ;;  %v2761_v62 = vadd.f32 %v2760_v28, %v2754_v33 }
 0x19d   : > { %v2742_v30 = vadd.f32 %v3616_v2, %v2741_v38  ;;  %v2762_v60 = vadd.f32 %v2761_v62, %v2755_v27 }
 0x19f   : > { %v2763_v49 = vadd.f32 %v2762_v60, %v2756_v47  ;;  %v2743_v7 = vrot.slane %v2742_v30, 4 }
 0x1a1   : > { %v2764_v46 = vrot.slane %v2763_v49, 4  ;;  %v2744_v29 = vadd.f32 %v2743_v7, %v2742_v30 }
 0x1a2   : > { %v3601_v53 = vpop.f32.mrb[0].mxu0 }
 0x1a3   : > { %v3617_v4 = vadd.f32 %v3601_v53, %v3481_v14  ;;  %v2520_v0 = vpop.f32.mrb[1].mxu0 }
 0x1a4   : > { %v3618_v61 = vadd.f32 %v2520_v0, %v1365_v22  ;;  %v3602_v39 = vpop.f32.mrb[2].mxu0 }
 0x1a5   : > { %v3619_v32 = vadd.f32 %v3602_v39, %v3482_v18  ;;  %v2523_v37 = vpop.f32.mrb[3].mxu0  ;;  %v2590_v50 = vmul.f32 %v3617_v4, %v3617_v4 }
 0x1a6   : > { %v3620_v51 = vadd.f32 %v2523_v37, %v1368_v36  ;;  %v2588_v34 = vmul.f32 %v3618_v61, %v3618_v61 }
 0x1a7   : > { %v3237_v10 = vpack.c.bf16 %v3619_v32, %v3617_v4  ;;  %v2591_v15 = vmul.f32 %v3619_v32, %v3619_v32 }
 0x1a8   : > { %v3232_v48 = vpack.c.bf16 %v3620_v51, %v3618_v61  ;;  %v2575_v57 = vadd.f32 %v3620_v51, %v3618_v61  ;;  %v2589_v1 = vmul.f32 %v3620_v51, %v3620_v51 }
 0x1a9   : > { %3272 = vst [vmem:[%s4502_s18 + $0x8] sm:$0xff] %v3237_v10  }
 0x1aa   : > { %3233 = vst [vmem:[%s4502_s18] sm:$0xff] %v3232_v48   ;;  %v2576_v20 = vadd.f32 %v3617_v4, %v2575_v57  ;;  %v2596_v42 = vadd.f32 %v2589_v1, %v2588_v34  ;;  %v3605_v5 = vpop.f32.mrb[4].mxu0 }
 0x1ab   : > { %v3621_v52 = vadd.f32 %v3605_v5, %v4486_v11  ;;  %v2536_v56 = vpop.f32.mrb[5].mxu0 }
 0x1ac   : > { %v2597_v16 = vadd.f32 %v2596_v42, %v2590_v50  ;;  %v3622_v8 = vadd.f32 %v2536_v56, %v4488_v43  ;;  %v2577_v14 = vadd.f32 %v3619_v32, %v2576_v20  ;;  %v3606_v22 = vpop.f32.mrb[6].mxu0 }
 0x1ad   : > { %v3623_v18 = vadd.f32 %v3606_v22, %v4490_v40  ;;  %v2539_v36 = vpop.f32.mrb[7].mxu0  ;;  %v2594_v43 = vmul.f32 %v3621_v52, %v3621_v52  ;;  %v2765_v40 = vadd.f32 %v2764_v46, %v2763_v49 }
 0x1ae   : > { %v2578_v25 = vadd.f32 %v3622_v8, %v2577_v14  ;;  %v2592_v35 = vmul.f32 %v3622_v8, %v3622_v8  ;;  %v2598_v31 = vadd.f32 %v2597_v16, %v2591_v15  ;;  %v3624_v55 = vadd.f32 %v2539_v36, %v4492_v26 }
 0x1af   : > { %v3247_v11 = vpack.c.bf16 %v3623_v18, %v3621_v52  ;;  %v2595_v45 = vmul.f32 %v3623_v18, %v3623_v18  ;;  %v2745_v26 = vrot.slane %v2744_v29, 2  ;;  %v2766_v21 = vrot.slane %v2765_v40, 2 }
 0x1b0   : > { %v2599_v41 = vadd.f32 %v2598_v31, %v2592_v35  ;;  %v3242_v6 = vpack.c.bf16 %v3624_v55, %v3622_v8  ;;  %v2579_v58 = vadd.f32 %v3624_v55, %v2578_v25  ;;  %v2593_v13 = vmul.f32 %v3624_v55, %v3624_v55 }
 0x1b1   : > { %3274 = vst [vmem:[%s4502_s18 + $0x18] sm:$0xff] %v3247_v11   ;;  %v2746_v19 = vadd.f32 %v2745_v26, %v2744_v29  ;;  %v2767_v28 = vadd.f32 %v2766_v21, %v2765_v40 }
 0x1b2   : > { %3273 = vst [vmem:[%s4502_s18 + $0x10] sm:$0xff] %v3242_v6   ;;  %v2580_v12 = vadd.f32 %v3621_v52, %v2579_v58  ;;  %v2600_v44 = vadd.f32 %v2599_v41, %v2593_v13 }
 0x1b3   : > { %v2747_v38 = vrot.slane %v2746_v19, 1  ;;  %v2768_v62 = vrot.slane %v2767_v28, 1 }
 0x1b4   : > { %v2581_v54 = vadd.f32 %v3623_v18, %v2580_v12  ;;  %v2601_v17 = vadd.f32 %v2600_v44, %v2594_v43 }
 0x1b5   : > { %v2748_v53 = vadd.f32 %v2747_v38, %v2746_v19  ;;  %v2769_v4 = vadd.f32 %v2768_v62, %v2767_v28 }
 0x1b6   : > { %v2582_v63 = vrot.slane %v2581_v54, 4  ;;  %v2602_v9 = vadd.f32 %v2601_v17, %v2595_v45 }
 0x1b8   : > { %v2583_v59 = vadd.f32 %v2582_v63, %v2581_v54  ;;  %v2603_v2 = vrot.slane %v2602_v9, 4 }
 0x1ba   : > { %v2584_v27 = vrot.slane %v2583_v59, 2  ;;  %v2604_v3 = vadd.f32 %v2603_v2, %v2602_v9 }
 0x1bc   : > { %v2585_v23 = vadd.f32 %v2584_v27, %v2583_v59  ;;  %v2605_v24 = vrot.slane %v2604_v3, 2 }
 0x1be   : > { %v2586_v33 = vrot.slane %v2585_v23, 1  ;;  %v2606_v47 = vadd.f32 %v2605_v24, %v2604_v3 }
 0x1c0   : > { %v2607_v30 = vrot.slane %v2606_v47, 1  ;;  %v2587_v60 = vadd.f32 %v2586_v33, %v2585_v23 }
 0x1c2   : > { %v2608_v49 = vadd.f32 %v2607_v30, %v2606_v47 }
 0x1c4   : > { %v2771_v0 = vsel %vm543_vm1, %v2587_v60, %v2608_v49 }
 0x1c5   : > { %v2772_v61 = vsel %vm2651_vm12, %v2771_v0, %v2748_v53 }
 0x1c6   : > { %v2774_v39 = vsel %vm1045_vm9, %v2772_v61, %v2769_v4 }
 0x1c7   : > { %2775 = vst [vmem:[%s348_s22] sm:$0xf] %v2774_v39 }
 0x1c8 PF: > { %s19_s27 = sadd.s32 1, %s3785_s27  }
 0x1c9   : > { %p16_p4 = scmp.ge.s32.totalorder %s19_s27, 4  }
 0x1cb   :  { %18 = sbr.rel (!%p16_p4) target bundleno = 1 (0x1), region = 111 }

</bundles_post_ra>
